<compile_context>
chip_gen: v7x
topology: tpu7x:2x2x1
jax: 0.10.0
libtpu: 0.0.40
codegen_flags: <defaults>
</compile_context>

<pallas_src>
import math
import functools

import jax
import jax.numpy as jnp
from jax import lax
from jax.experimental import pallas as pl
from jax.experimental.pallas import tpu as pltpu


# ----------------------------------------------------------------------------
# Fused kernel: full network forward for ONE sample (one grid step = one batch
# element; grid axis is "parallel" so v7x shards it over both TensorCores).
# ----------------------------------------------------------------------------
def fused_net_kernel(ids_ref, pe_ref, emb_ref, wqkv_ref, wo_ref,
                     w1_ref, w2_ref, vec_ref, fc_ref, out_ref,
                     *, seq, nhead, nlayers, embed_dim, ff_dim):
    S, H, L, E, F = seq, nhead, nlayers, embed_dim, ff_dim
    D = E // H
    V = emb_ref.shape[0]                      # lane-padded vocab (multiple of 128)
    scale = 1.0 / math.sqrt(D)

    # ---- embedding gather as one-hot matmul (bf16 MXU, f32 accumulate) ------
    ids = ids_ref[...]                                        # (S, 1) int32
    iota = lax.broadcasted_iota(jnp.int32, (S, V), 1)         # (S, V)
    one_hot = (ids == iota).astype(jnp.float32).astype(jnp.bfloat16)
    h = jnp.dot(one_hot, emb_ref[...],
                preferred_element_type=jnp.float32) * math.sqrt(E)
    h = h + pe_ref[...]                                       # (S, E) f32

    def layer_norm(x, w, b):
        mu = jnp.mean(x, axis=-1, keepdims=True)
        var = jnp.mean((x - mu) ** 2, axis=-1, keepdims=True)
        return (x - mu) * lax.rsqrt(var + 1e-5) * w + b

    # ---- encoder layers (static unroll over L=2; weights stacked per layer) -
    for l in range(L):
        # fused QKV projection: single (S,E)x(E,3E) bf16 matmul
        qkv = jnp.dot(h.astype(jnp.bfloat16), wqkv_ref[l],
                      preferred_element_type=jnp.float32)
        qkv = qkv + vec_ref[l, 0:1, :3 * E]                   # (S, 3E)

        # per-head attention core (tiny SxS blocks); contexts concatenated
        # back to (S, E) so the output projection is one full-width matmul.
        ctx_parts = []
        for hd in range(H):                                   # static unroll
            q = qkv[:, hd * D:(hd + 1) * D]                   # (S, D)
            k = qkv[:, E + hd * D:E + (hd + 1) * D]
            v = qkv[:, 2 * E + hd * D:2 * E + (hd + 1) * D]
            s = jnp.einsum('sd,td->st', q, k,
                           preferred_element_type=jnp.float32) * scale
            s = s - jnp.max(s, axis=-1, keepdims=True)
            p = jnp.exp(s)
            p = p * pl.reciprocal(jnp.sum(p, axis=-1, keepdims=True),
                                  approx=True)
            ctx_parts.append(jnp.dot(p, v,
                                     preferred_element_type=jnp.float32))
        ctx = jnp.concatenate(ctx_parts, axis=-1)             # (S, E)

        # fused output projection (one (S,E)x(E,E) matmul) + bias
        attn = jnp.dot(ctx.astype(jnp.bfloat16), wo_ref[l],
                       preferred_element_type=jnp.float32) + vec_ref[l, 1:2, :E]

        # add & LayerNorm 1 (post-norm)
        y = layer_norm(h + attn, vec_ref[l, 2:3, :E], vec_ref[l, 3:4, :E])

        # feed-forward: Linear -> ReLU -> Linear
        ff = jnp.dot(y.astype(jnp.bfloat16), w1_ref[l],
                     preferred_element_type=jnp.float32) + vec_ref[l, 4:5, :F]
        ff = jnp.maximum(ff, 0.0)
        ff = jnp.dot(ff.astype(jnp.bfloat16), w2_ref[l],
                     preferred_element_type=jnp.float32) + vec_ref[l, 5:6, :E]

        # add & LayerNorm 2
        h = layer_norm(y + ff, vec_ref[l, 6:7, :E], vec_ref[l, 7:8, :E])

    # ---- mean over sequence folded into a matmul, then fc head --------------
    mean_vec = jnp.full((1, S), 1.0 / S, jnp.float32)
    m = jnp.dot(mean_vec, h, preferred_element_type=jnp.float32)   # (1, E)
    logits = jnp.dot(m, fc_ref[:E],
                     preferred_element_type=jnp.float32) + fc_ref[E:E + 1]
    out_ref[0] = logits                                            # (1, 128)


# ----------------------------------------------------------------------------
# Wrapper: host-side layout prep + single pallas_call with batch grid.
# ----------------------------------------------------------------------------
def net_forward(x_ids, params, pe, *, nhead, nclass=5):
    """x_ids: (S, N) int32 token ids -> (N, nclass) f32 logits."""
    S, N = x_ids.shape
    L, E, _ = params["wqkv"].shape
    F = params["w1"].shape[2]
    C = params["fc"].shape[1]                      # lane-padded class width (128)

    ids_flat = x_ids.T.reshape(N * S, 1).astype(jnp.int32)   # row = n*S + s
    pe_s = pe[:S]                                            # (S, E)

    kernel = functools.partial(fused_net_kernel, seq=S, nhead=nhead,
                               nlayers=L, embed_dim=E, ff_dim=F)

    def full(a):   # whole-array block, constant index -> fetched once
        return pl.BlockSpec(a.shape, lambda b, nd=a.ndim: (0,) * nd)

    out_pad = pl.pallas_call(
        kernel,
        out_shape=jax.ShapeDtypeStruct((N, 1, C), jnp.float32),
        grid=(N,),
        in_specs=[
            pl.BlockSpec((S, 1), lambda b: (b, 0)),   # ids: one sample/step
            full(pe_s),
            full(params["emb"]),
            full(params["wqkv"]),
            full(params["wo"]),
            full(params["w1"]),
            full(params["w2"]),
            full(params["vec"]),
            full(params["fc"]),
        ],
        out_specs=pl.BlockSpec((1, 1, C), lambda b: (b, 0, 0)),
        compiler_params=pltpu.CompilerParams(
            dimension_semantics=("parallel",)),
    )(ids_flat, pe_s, params["emb"], params["wqkv"], params["wo"],
      params["w1"], params["w2"], params["vec"], params["fc"])

    return out_pad.reshape(N, C)[:, :nclass]


# ----------------------------------------------------------------------------
# Parameter setup (deterministic, synthetic), pre-arranged for the kernel:
#   wqkv (L,E,3E) / wo (L,E,E) / w1 (L,E,F) / w2 (L,F,E) in bf16,
#   all per-layer vectors packed into one (L,8,128) f32 slab,
#   fc weight+bias packed into one (E+8,128) f32 slab.
# ----------------------------------------------------------------------------
def sinusoidal_pe(max_seq, E):
    position = jnp.arange(max_seq, dtype=jnp.float32)[:, None]
    div_term = jnp.exp(jnp.arange(0, E, 2, dtype=jnp.float32)
                       * (-math.log(10000.0) / E))
    pe = jnp.zeros((max_seq, E), jnp.float32)
    pe = pe.at[:, 0::2].set(jnp.sin(position * div_term))
    pe = pe.at[:, 1::2].set(jnp.cos(position * div_term))
    return pe                                             # (max_seq, E)


def init_params(key, vocab, E, nhead, nlayers, F, nclass=5, lane_pad=128):
    assert 3 * E <= lane_pad and F <= lane_pad and nclass <= lane_pad
    vpad = ((vocab + lane_pad - 1) // lane_pad) * lane_pad
    keys = jax.random.split(key, 3 + nlayers)

    emb = jax.random.normal(keys[0], (vocab, E), jnp.float32) * 0.1
    emb_pad = jnp.zeros((vpad, E), jnp.float32).at[:vocab].set(emb)

    wqkv, wo, w1, w2, vec = [], [], [], [], []
    for l in range(nlayers):
        k = jax.random.split(keys[3 + l], 8)
        in_w = jax.random.normal(k[0], (3 * E, E), jnp.float32) * 0.05  # in_proj_weight
        in_b = jax.random.normal(k[1], (3 * E,), jnp.float32) * 0.01    # in_proj_bias
        W_o = jax.random.normal(k[2], (E, E), jnp.float32) * 0.05       # out_proj
        b_o = jax.random.normal(k[3], (E,), jnp.float32) * 0.01
        W_1 = jax.random.normal(k[4], (F, E), jnp.float32) * 0.05       # linear1
        b_1 = jax.random.normal(k[5], (F,), jnp.float32) * 0.01
        W_2 = jax.random.normal(k[6], (E, F), jnp.float32) * 0.05       # linear2
        b_2 = jax.random.normal(k[7], (E,), jnp.float32) * 0.01

        wqkv.append(in_w.T)        # (E, 3E): columns = [Q | K | V], head-major
        wo.append(W_o.T)           # (E, E)
        w1.append(W_1.T)           # (E, F)
        w2.append(W_2.T)           # (F, E)

        rows = jnp.zeros((8, lane_pad), jnp.float32)
        rows = rows.at[0, :3 * E].set(in_b)                          # qkv bias
        rows = rows.at[1, :E].set(b_o)                               # out-proj bias
        rows = rows.at[2, :E].set(jnp.ones((E,), jnp.float32))       # ln1 weight
        # row 3: ln1 bias (zeros)
        rows = rows.at[4, :F].set(b_1)                               # linear1 bias
        rows = rows.at[5, :E].set(b_2)                               # linear2 bias
        rows = rows.at[6, :E].set(jnp.ones((E,), jnp.float32))       # ln2 weight
        # row 7: ln2 bias (zeros)
        vec.append(rows)

    fc_w = jax.random.normal(keys[1], (nclass, E), jnp.float32) * 0.05
    fc_b = jax.random.normal(keys[2], (nclass,), jnp.float32) * 0.01
    fc = jnp.zeros((E + 8, lane_pad), jnp.float32)
    fc = fc.at[:E, :nclass].set(fc_w.T)
    fc = fc.at[E, :nclass].set(fc_b)

    stk = lambda xs: jnp.stack(xs, axis=0)
    return {
        "emb": emb_pad.astype(jnp.bfloat16),
        "wqkv": stk(wqkv).astype(jnp.bfloat16),
        "wo": stk(wo).astype(jnp.bfloat16),
        "w1": stk(w1).astype(jnp.bfloat16),
        "w2": stk(w2).astype(jnp.bfloat16),
        "vec": stk(vec),
        "fc": fc,
    }


if __name__ == "__main__":
    vocab_size = 50
    embed_dim = 32
    nhead = 4
    num_encoder_layers = 2
    dim_feedforward = 64
    max_seq_length = 16
    seq_len = 8
    batch = 2

    root = jax.random.PRNGKey(0)
    k_param, k_data = jax.random.split(root)
    params = init_params(k_param, vocab_size, embed_dim, nhead,
                         num_encoder_layers, dim_feedforward)
    pe = sinusoidal_pe(max_seq_length, embed_dim)

    x_ids = jax.random.randint(k_data, (seq_len, batch), 0, vocab_size,
                               dtype=jnp.int32)

    fwd = jax.jit(functools.partial(net_forward, nhead=nhead))
    out = jax.block_until_ready(fwd(x_ids, params, pe))

    assert out.shape == (batch, 5) and out.dtype == jnp.float32
    assert bool(jnp.all(jnp.isfinite(out)))
    print("KERNEL_OK")
</pallas_src>

<mosaic_0001>
module attributes {stable_mosaic.version = 11 : i64} {
  func.func @fused_net_kernel(%arg0: i32, %arg1: memref<8x1xi32, #tpu.memory_space<vmem>>, %arg2: memref<8x32xf32, #tpu.memory_space<vmem>>, %arg3: memref<128x32xbf16, #tpu.memory_space<vmem>>, %arg4: memref<2x32x96xbf16, #tpu.memory_space<vmem>>, %arg5: memref<2x32x32xbf16, #tpu.memory_space<vmem>>, %arg6: memref<2x32x64xbf16, #tpu.memory_space<vmem>>, %arg7: memref<2x64x32xbf16, #tpu.memory_space<vmem>>, %arg8: memref<2x8x128xf32, #tpu.memory_space<vmem>>, %arg9: memref<40x128xf32, #tpu.memory_space<vmem>>, %arg10: memref<1x1x128xf32, #tpu.memory_space<vmem>>) attributes {dimension_semantics = [#tpu.dimension_semantics<parallel>], iteration_bounds = array<i64: 2>, scalar_prefetch = 0 : i64, scratch_operands = 0 : i64, tpu.core_type = #tpu.core_type<tc>, window_params = [{transform_indices = @transform_0, window_bounds = array<i64: 8, 1>}, {pipeline_mode = #tpu.pipeline_mode<synchronous>, transform_indices = @transform_1, window_bounds = array<i64: 8, 32>}, {pipeline_mode = #tpu.pipeline_mode<synchronous>, transform_indices = @transform_2, window_bounds = array<i64: 128, 32>}, {pipeline_mode = #tpu.pipeline_mode<synchronous>, transform_indices = @transform_3, window_bounds = array<i64: 2, 32, 96>}, {pipeline_mode = #tpu.pipeline_mode<synchronous>, transform_indices = @transform_4, window_bounds = array<i64: 2, 32, 32>}, {pipeline_mode = #tpu.pipeline_mode<synchronous>, transform_indices = @transform_5, window_bounds = array<i64: 2, 32, 64>}, {pipeline_mode = #tpu.pipeline_mode<synchronous>, transform_indices = @transform_6, window_bounds = array<i64: 2, 64, 32>}, {pipeline_mode = #tpu.pipeline_mode<synchronous>, transform_indices = @transform_7, window_bounds = array<i64: 2, 8, 128>}, {pipeline_mode = #tpu.pipeline_mode<synchronous>, transform_indices = @transform_8, window_bounds = array<i64: 40, 128>}, {transform_indices = @transform_9, window_bounds = array<i64: 1, 1, 128>}]} {
    %c0 = arith.constant 0 : index
    %c0_0 = arith.constant 0 : index
    %0 = vector.load %arg1[%c0, %c0_0] : memref<8x1xi32, #tpu.memory_space<vmem>>, vector<8x1xi32>
    %1 = tpu.iota {dimensions = array<i32: 1>} : vector<8x128xi32>
    %2 = vector.broadcast %0 : vector<8x1xi32> to vector<8x128xi32>
    %3 = arith.cmpi eq, %2, %1 : vector<8x128xi32>
    %4 = arith.extui %3 : vector<8x128xi1> to vector<8x128xi32>
    %5 = arith.sitofp %4 : vector<8x128xi32> to vector<8x128xf32>
    %6 = arith.truncf %5 : vector<8x128xf32> to vector<8x128xbf16>
    %c0_1 = arith.constant 0 : index
    %c0_2 = arith.constant 0 : index
    %7 = vector.load %arg3[%c0_1, %c0_2] : memref<128x32xbf16, #tpu.memory_space<vmem>>, vector<128x32xbf16>
    %cst = arith.constant dense<0.000000e+00> : vector<8x32xf32>
    %8 = tpu.matmul %6, %7, %cst {dimension_numbers = #tpu.dot_dimension_numbers<[1], [0], [0], [1], [0, 0, 1, 1], [], []>} : vector<8x128xbf16>, vector<128x32xbf16>, vector<8x32xf32> -> vector<8x32xf32>
    %cst_3 = arith.constant 5.65685415 : f32
    %9 = vector.broadcast %cst_3 : f32 to vector<8x32xf32>
    %10 = arith.mulf %8, %9 : vector<8x32xf32>
    %c0_4 = arith.constant 0 : index
    %c0_5 = arith.constant 0 : index
    %11 = vector.load %arg2[%c0_4, %c0_5] : memref<8x32xf32, #tpu.memory_space<vmem>>, vector<8x32xf32>
    %12 = arith.addf %10, %11 : vector<8x32xf32>
    %13 = arith.truncf %12 : vector<8x32xf32> to vector<8x32xbf16>
    %c0_6 = arith.constant 0 : index
    %c0_7 = arith.constant 0 : index
    %c0_8 = arith.constant 0 : index
    %14 = vector.load %arg4[%c0_6, %c0_7, %c0_8] : memref<2x32x96xbf16, #tpu.memory_space<vmem>>, vector<1x32x96xbf16>
    %15 = vector.shape_cast %14 : vector<1x32x96xbf16> to vector<32x96xbf16>
    %cst_9 = arith.constant dense<0.000000e+00> : vector<8x96xf32>
    %16 = tpu.matmul %13, %15, %cst_9 {dimension_numbers = #tpu.dot_dimension_numbers<[1], [0], [0], [1], [0, 0, 1, 1], [], []>} : vector<8x32xbf16>, vector<32x96xbf16>, vector<8x96xf32> -> vector<8x96xf32>
    %c0_10 = arith.constant 0 : index
    %c0_11 = arith.constant 0 : index
    %c0_12 = arith.constant 0 : index
    %17 = vector.load %arg8[%c0_10, %c0_11, %c0_12] : memref<2x8x128xf32, #tpu.memory_space<vmem>>, vector<1x1x96xf32>
    %18 = vector.shape_cast %17 : vector<1x1x96xf32> to vector<1x96xf32>
    %19 = vector.broadcast %18 : vector<1x96xf32> to vector<8x96xf32>
    %20 = arith.addf %16, %19 : vector<8x96xf32>
    %21 = vector.extract_strided_slice %20 {offsets = [0, 0], sizes = [8, 8], strides = [1, 1]} : vector<8x96xf32> to vector<8x8xf32>
    %22 = vector.extract_strided_slice %20 {offsets = [0, 32], sizes = [8, 8], strides = [1, 1]} : vector<8x96xf32> to vector<8x8xf32>
    %23 = vector.extract_strided_slice %20 {offsets = [0, 64], sizes = [8, 8], strides = [1, 1]} : vector<8x96xf32> to vector<8x8xf32>
    "tpu.trace_start"() <{level = 10 : i32, message = "sd,td->st"}> : () -> ()
    %cst_13 = arith.constant dense<0.000000e+00> : vector<8x8xf32>
    %24 = tpu.matmul %21, %22, %cst_13 {dimension_numbers = #tpu.dot_dimension_numbers<[1], [1], [0], [0], [0, 0, 1, 0], [], []>} : vector<8x8xf32>, vector<8x8xf32>, vector<8x8xf32> -> vector<8x8xf32>
    "tpu.trace_stop"() : () -> ()
    %cst_14 = arith.constant 0.353553385 : f32
    %25 = vector.broadcast %cst_14 : f32 to vector<8x8xf32>
    %26 = arith.mulf %24, %25 : vector<8x8xf32>
    %cst_15 = arith.constant dense<0xFF800000> : vector<8xf32>
    %27 = vector.multi_reduction <maximumf>, %26, %cst_15 [1] : vector<8x8xf32> to vector<8xf32>
    %28 = vector.shape_cast %27 : vector<8xf32> to vector<8x1xf32>
    %29 = vector.broadcast %28 : vector<8x1xf32> to vector<8x8xf32>
    %30 = arith.subf %26, %29 : vector<8x8xf32>
    %31 = math.exp %30 : vector<8x8xf32>
    %cst_16 = arith.constant dense<0.000000e+00> : vector<8xf32>
    %32 = vector.multi_reduction <add>, %31, %cst_16 [1] : vector<8x8xf32> to vector<8xf32>
    %33 = vector.shape_cast %32 : vector<8xf32> to vector<8x1xf32>
    %34 = tpu.reciprocal %33 {approx = true} : vector<8x1xf32> -> vector<8x1xf32>
    %35 = vector.broadcast %34 : vector<8x1xf32> to vector<8x8xf32>
    %36 = arith.mulf %31, %35 : vector<8x8xf32>
    %cst_17 = arith.constant dense<0.000000e+00> : vector<8x8xf32>
    %37 = tpu.matmul %36, %23, %cst_17 {dimension_numbers = #tpu.dot_dimension_numbers<[1], [0], [0], [1], [0, 0, 1, 1], [], []>} : vector<8x8xf32>, vector<8x8xf32>, vector<8x8xf32> -> vector<8x8xf32>
    %38 = vector.extract_strided_slice %20 {offsets = [0, 8], sizes = [8, 8], strides = [1, 1]} : vector<8x96xf32> to vector<8x8xf32>
    %39 = vector.extract_strided_slice %20 {offsets = [0, 40], sizes = [8, 8], strides = [1, 1]} : vector<8x96xf32> to vector<8x8xf32>
    %40 = vector.extract_strided_slice %20 {offsets = [0, 72], sizes = [8, 8], strides = [1, 1]} : vector<8x96xf32> to vector<8x8xf32>
    "tpu.trace_start"() <{level = 10 : i32, message = "sd,td->st"}> : () -> ()
    %cst_18 = arith.constant dense<0.000000e+00> : vector<8x8xf32>
    %41 = tpu.matmul %38, %39, %cst_18 {dimension_numbers = #tpu.dot_dimension_numbers<[1], [1], [0], [0], [0, 0, 1, 0], [], []>} : vector<8x8xf32>, vector<8x8xf32>, vector<8x8xf32> -> vector<8x8xf32>
    "tpu.trace_stop"() : () -> ()
    %cst_19 = arith.constant 0.353553385 : f32
    %42 = vector.broadcast %cst_19 : f32 to vector<8x8xf32>
    %43 = arith.mulf %41, %42 : vector<8x8xf32>
    %cst_20 = arith.constant dense<0xFF800000> : vector<8xf32>
    %44 = vector.multi_reduction <maximumf>, %43, %cst_20 [1] : vector<8x8xf32> to vector<8xf32>
    %45 = vector.shape_cast %44 : vector<8xf32> to vector<8x1xf32>
    %46 = vector.broadcast %45 : vector<8x1xf32> to vector<8x8xf32>
    %47 = arith.subf %43, %46 : vector<8x8xf32>
    %48 = math.exp %47 : vector<8x8xf32>
    %cst_21 = arith.constant dense<0.000000e+00> : vector<8xf32>
    %49 = vector.multi_reduction <add>, %48, %cst_21 [1] : vector<8x8xf32> to vector<8xf32>
    %50 = vector.shape_cast %49 : vector<8xf32> to vector<8x1xf32>
    %51 = tpu.reciprocal %50 {approx = true} : vector<8x1xf32> -> vector<8x1xf32>
    %52 = vector.broadcast %51 : vector<8x1xf32> to vector<8x8xf32>
    %53 = arith.mulf %48, %52 : vector<8x8xf32>
    %cst_22 = arith.constant dense<0.000000e+00> : vector<8x8xf32>
    %54 = tpu.matmul %53, %40, %cst_22 {dimension_numbers = #tpu.dot_dimension_numbers<[1], [0], [0], [1], [0, 0, 1, 1], [], []>} : vector<8x8xf32>, vector<8x8xf32>, vector<8x8xf32> -> vector<8x8xf32>
    %55 = vector.extract_strided_slice %20 {offsets = [0, 16], sizes = [8, 8], strides = [1, 1]} : vector<8x96xf32> to vector<8x8xf32>
    %56 = vector.extract_strided_slice %20 {offsets = [0, 48], sizes = [8, 8], strides = [1, 1]} : vector<8x96xf32> to vector<8x8xf32>
    %57 = vector.extract_strided_slice %20 {offsets = [0, 80], sizes = [8, 8], strides = [1, 1]} : vector<8x96xf32> to vector<8x8xf32>
    "tpu.trace_start"() <{level = 10 : i32, message = "sd,td->st"}> : () -> ()
    %cst_23 = arith.constant dense<0.000000e+00> : vector<8x8xf32>
    %58 = tpu.matmul %55, %56, %cst_23 {dimension_numbers = #tpu.dot_dimension_numbers<[1], [1], [0], [0], [0, 0, 1, 0], [], []>} : vector<8x8xf32>, vector<8x8xf32>, vector<8x8xf32> -> vector<8x8xf32>
    "tpu.trace_stop"() : () -> ()
    %cst_24 = arith.constant 0.353553385 : f32
    %59 = vector.broadcast %cst_24 : f32 to vector<8x8xf32>
    %60 = arith.mulf %58, %59 : vector<8x8xf32>
    %cst_25 = arith.constant dense<0xFF800000> : vector<8xf32>
    %61 = vector.multi_reduction <maximumf>, %60, %cst_25 [1] : vector<8x8xf32> to vector<8xf32>
    %62 = vector.shape_cast %61 : vector<8xf32> to vector<8x1xf32>
    %63 = vector.broadcast %62 : vector<8x1xf32> to vector<8x8xf32>
    %64 = arith.subf %60, %63 : vector<8x8xf32>
    %65 = math.exp %64 : vector<8x8xf32>
    %cst_26 = arith.constant dense<0.000000e+00> : vector<8xf32>
    %66 = vector.multi_reduction <add>, %65, %cst_26 [1] : vector<8x8xf32> to vector<8xf32>
    %67 = vector.shape_cast %66 : vector<8xf32> to vector<8x1xf32>
    %68 = tpu.reciprocal %67 {approx = true} : vector<8x1xf32> -> vector<8x1xf32>
    %69 = vector.broadcast %68 : vector<8x1xf32> to vector<8x8xf32>
    %70 = arith.mulf %65, %69 : vector<8x8xf32>
    %cst_27 = arith.constant dense<0.000000e+00> : vector<8x8xf32>
    %71 = tpu.matmul %70, %57, %cst_27 {dimension_numbers = #tpu.dot_dimension_numbers<[1], [0], [0], [1], [0, 0, 1, 1], [], []>} : vector<8x8xf32>, vector<8x8xf32>, vector<8x8xf32> -> vector<8x8xf32>
    %72 = vector.extract_strided_slice %20 {offsets = [0, 24], sizes = [8, 8], strides = [1, 1]} : vector<8x96xf32> to vector<8x8xf32>
    %73 = vector.extract_strided_slice %20 {offsets = [0, 56], sizes = [8, 8], strides = [1, 1]} : vector<8x96xf32> to vector<8x8xf32>
    %74 = vector.extract_strided_slice %20 {offsets = [0, 88], sizes = [8, 8], strides = [1, 1]} : vector<8x96xf32> to vector<8x8xf32>
    "tpu.trace_start"() <{level = 10 : i32, message = "sd,td->st"}> : () -> ()
    %cst_28 = arith.constant dense<0.000000e+00> : vector<8x8xf32>
    %75 = tpu.matmul %72, %73, %cst_28 {dimension_numbers = #tpu.dot_dimension_numbers<[1], [1], [0], [0], [0, 0, 1, 0], [], []>} : vector<8x8xf32>, vector<8x8xf32>, vector<8x8xf32> -> vector<8x8xf32>
    "tpu.trace_stop"() : () -> ()
    %cst_29 = arith.constant 0.353553385 : f32
    %76 = vector.broadcast %cst_29 : f32 to vector<8x8xf32>
    %77 = arith.mulf %75, %76 : vector<8x8xf32>
    %cst_30 = arith.constant dense<0xFF800000> : vector<8xf32>
    %78 = vector.multi_reduction <maximumf>, %77, %cst_30 [1] : vector<8x8xf32> to vector<8xf32>
    %79 = vector.shape_cast %78 : vector<8xf32> to vector<8x1xf32>
    %80 = vector.broadcast %79 : vector<8x1xf32> to vector<8x8xf32>
    %81 = arith.subf %77, %80 : vector<8x8xf32>
    %82 = math.exp %81 : vector<8x8xf32>
    %cst_31 = arith.constant dense<0.000000e+00> : vector<8xf32>
    %83 = vector.multi_reduction <add>, %82, %cst_31 [1] : vector<8x8xf32> to vector<8xf32>
    %84 = vector.shape_cast %83 : vector<8xf32> to vector<8x1xf32>
    %85 = tpu.reciprocal %84 {approx = true} : vector<8x1xf32> -> vector<8x1xf32>
    %86 = vector.broadcast %85 : vector<8x1xf32> to vector<8x8xf32>
    %87 = arith.mulf %82, %86 : vector<8x8xf32>
    %cst_32 = arith.constant dense<0.000000e+00> : vector<8x8xf32>
    %88 = tpu.matmul %87, %74, %cst_32 {dimension_numbers = #tpu.dot_dimension_numbers<[1], [0], [0], [1], [0, 0, 1, 1], [], []>} : vector<8x8xf32>, vector<8x8xf32>, vector<8x8xf32> -> vector<8x8xf32>
    %89 = tpu.concatenate %37, %54, %71, %88 in 1 : vector<8x8xf32>, vector<8x8xf32>, vector<8x8xf32>, vector<8x8xf32> -> vector<8x32xf32>
    %90 = arith.truncf %89 : vector<8x32xf32> to vector<8x32xbf16>
    %c0_33 = arith.constant 0 : index
    %c0_34 = arith.constant 0 : index
    %c0_35 = arith.constant 0 : index
    %91 = vector.load %arg5[%c0_33, %c0_34, %c0_35] : memref<2x32x32xbf16, #tpu.memory_space<vmem>>, vector<1x32x32xbf16>
    %92 = vector.shape_cast %91 : vector<1x32x32xbf16> to vector<32x32xbf16>
    %cst_36 = arith.constant dense<0.000000e+00> : vector<8x32xf32>
    %93 = tpu.matmul %90, %92, %cst_36 {dimension_numbers = #tpu.dot_dimension_numbers<[1], [0], [0], [1], [0, 0, 1, 1], [], []>} : vector<8x32xbf16>, vector<32x32xbf16>, vector<8x32xf32> -> vector<8x32xf32>
    %c0_37 = arith.constant 0 : index
    %c1 = arith.constant 1 : index
    %c0_38 = arith.constant 0 : index
    %94 = vector.load %arg8[%c0_37, %c1, %c0_38] : memref<2x8x128xf32, #tpu.memory_space<vmem>>, vector<1x1x32xf32>
    %95 = vector.shape_cast %94 : vector<1x1x32xf32> to vector<1x32xf32>
    %96 = vector.broadcast %95 : vector<1x32xf32> to vector<8x32xf32>
    %97 = arith.addf %93, %96 : vector<8x32xf32>
    %98 = arith.addf %12, %97 : vector<8x32xf32>
    %c0_39 = arith.constant 0 : index
    %c2 = arith.constant 2 : index
    %c0_40 = arith.constant 0 : index
    %99 = vector.load %arg8[%c0_39, %c2, %c0_40] : memref<2x8x128xf32, #tpu.memory_space<vmem>>, vector<1x1x32xf32>
    %100 = vector.shape_cast %99 : vector<1x1x32xf32> to vector<1x32xf32>
    %c0_41 = arith.constant 0 : index
    %c3 = arith.constant 3 : index
    %c0_42 = arith.constant 0 : index
    %101 = vector.load %arg8[%c0_41, %c3, %c0_42] : memref<2x8x128xf32, #tpu.memory_space<vmem>>, vector<1x1x32xf32>
    %102 = vector.shape_cast %101 : vector<1x1x32xf32> to vector<1x32xf32>
    %cst_43 = arith.constant dense<0.000000e+00> : vector<8xf32>
    %103 = vector.multi_reduction <add>, %98, %cst_43 [1] : vector<8x32xf32> to vector<8xf32>
    %104 = vector.shape_cast %103 : vector<8xf32> to vector<8x1xf32>
    %cst_44 = arith.constant 3.200000e+01 : f32
    %105 = vector.broadcast %cst_44 : f32 to vector<8x1xf32>
    %106 = arith.divf %104, %105 : vector<8x1xf32>
    %107 = vector.broadcast %106 : vector<8x1xf32> to vector<8x32xf32>
    %108 = arith.subf %98, %107 : vector<8x32xf32>
    %109 = arith.mulf %108, %108 : vector<8x32xf32>
    %cst_45 = arith.constant dense<0.000000e+00> : vector<8xf32>
    %110 = vector.multi_reduction <add>, %109, %cst_45 [1] : vector<8x32xf32> to vector<8xf32>
    %111 = vector.shape_cast %110 : vector<8xf32> to vector<8x1xf32>
    %cst_46 = arith.constant 3.200000e+01 : f32
    %112 = vector.broadcast %cst_46 : f32 to vector<8x1xf32>
    %113 = arith.divf %111, %112 : vector<8x1xf32>
    %114 = vector.broadcast %106 : vector<8x1xf32> to vector<8x32xf32>
    %115 = arith.subf %98, %114 : vector<8x32xf32>
    %cst_47 = arith.constant 9.99999974E-6 : f32
    %116 = vector.broadcast %cst_47 : f32 to vector<8x1xf32>
    %117 = arith.addf %113, %116 : vector<8x1xf32>
    %118 = math.rsqrt %117 : vector<8x1xf32>
    %119 = vector.broadcast %118 : vector<8x1xf32> to vector<8x32xf32>
    %120 = arith.mulf %115, %119 : vector<8x32xf32>
    %121 = vector.broadcast %100 : vector<1x32xf32> to vector<8x32xf32>
    %122 = arith.mulf %120, %121 : vector<8x32xf32>
    %123 = vector.broadcast %102 : vector<1x32xf32> to vector<8x32xf32>
    %124 = arith.addf %122, %123 : vector<8x32xf32>
    %125 = arith.truncf %124 : vector<8x32xf32> to vector<8x32xbf16>
    %c0_48 = arith.constant 0 : index
    %c0_49 = arith.constant 0 : index
    %c0_50 = arith.constant 0 : index
    %126 = vector.load %arg6[%c0_48, %c0_49, %c0_50] : memref<2x32x64xbf16, #tpu.memory_space<vmem>>, vector<1x32x64xbf16>
    %127 = vector.shape_cast %126 : vector<1x32x64xbf16> to vector<32x64xbf16>
    %cst_51 = arith.constant dense<0.000000e+00> : vector<8x64xf32>
    %128 = tpu.matmul %125, %127, %cst_51 {dimension_numbers = #tpu.dot_dimension_numbers<[1], [0], [0], [1], [0, 0, 1, 1], [], []>} : vector<8x32xbf16>, vector<32x64xbf16>, vector<8x64xf32> -> vector<8x64xf32>
    %c0_52 = arith.constant 0 : index
    %c4 = arith.constant 4 : index
    %c0_53 = arith.constant 0 : index
    %129 = vector.load %arg8[%c0_52, %c4, %c0_53] : memref<2x8x128xf32, #tpu.memory_space<vmem>>, vector<1x1x64xf32>
    %130 = vector.shape_cast %129 : vector<1x1x64xf32> to vector<1x64xf32>
    %131 = vector.broadcast %130 : vector<1x64xf32> to vector<8x64xf32>
    %132 = arith.addf %128, %131 : vector<8x64xf32>
    %cst_54 = arith.constant 0.000000e+00 : f32
    %133 = vector.broadcast %cst_54 : f32 to vector<8x64xf32>
    %134 = arith.maximumf %132, %133 : vector<8x64xf32>
    %135 = arith.truncf %134 : vector<8x64xf32> to vector<8x64xbf16>
    %c0_55 = arith.constant 0 : index
    %c0_56 = arith.constant 0 : index
    %c0_57 = arith.constant 0 : index
    %136 = vector.load %arg7[%c0_55, %c0_56, %c0_57] : memref<2x64x32xbf16, #tpu.memory_space<vmem>>, vector<1x64x32xbf16>
    %137 = vector.shape_cast %136 : vector<1x64x32xbf16> to vector<64x32xbf16>
    %cst_58 = arith.constant dense<0.000000e+00> : vector<8x32xf32>
    %138 = tpu.matmul %135, %137, %cst_58 {dimension_numbers = #tpu.dot_dimension_numbers<[1], [0], [0], [1], [0, 0, 1, 1], [], []>} : vector<8x64xbf16>, vector<64x32xbf16>, vector<8x32xf32> -> vector<8x32xf32>
    %c0_59 = arith.constant 0 : index
    %c5 = arith.constant 5 : index
    %c0_60 = arith.constant 0 : index
    %139 = vector.load %arg8[%c0_59, %c5, %c0_60] : memref<2x8x128xf32, #tpu.memory_space<vmem>>, vector<1x1x32xf32>
    %140 = vector.shape_cast %139 : vector<1x1x32xf32> to vector<1x32xf32>
    %141 = vector.broadcast %140 : vector<1x32xf32> to vector<8x32xf32>
    %142 = arith.addf %138, %141 : vector<8x32xf32>
    %143 = arith.addf %124, %142 : vector<8x32xf32>
    %c0_61 = arith.constant 0 : index
    %c6 = arith.constant 6 : index
    %c0_62 = arith.constant 0 : index
    %144 = vector.load %arg8[%c0_61, %c6, %c0_62] : memref<2x8x128xf32, #tpu.memory_space<vmem>>, vector<1x1x32xf32>
    %145 = vector.shape_cast %144 : vector<1x1x32xf32> to vector<1x32xf32>
    %c0_63 = arith.constant 0 : index
    %c7 = arith.constant 7 : index
    %c0_64 = arith.constant 0 : index
    %146 = vector.load %arg8[%c0_63, %c7, %c0_64] : memref<2x8x128xf32, #tpu.memory_space<vmem>>, vector<1x1x32xf32>
    %147 = vector.shape_cast %146 : vector<1x1x32xf32> to vector<1x32xf32>
    %cst_65 = arith.constant dense<0.000000e+00> : vector<8xf32>
    %148 = vector.multi_reduction <add>, %143, %cst_65 [1] : vector<8x32xf32> to vector<8xf32>
    %149 = vector.shape_cast %148 : vector<8xf32> to vector<8x1xf32>
    %cst_66 = arith.constant 3.200000e+01 : f32
    %150 = vector.broadcast %cst_66 : f32 to vector<8x1xf32>
    %151 = arith.divf %149, %150 : vector<8x1xf32>
    %152 = vector.broadcast %151 : vector<8x1xf32> to vector<8x32xf32>
    %153 = arith.subf %143, %152 : vector<8x32xf32>
    %154 = arith.mulf %153, %153 : vector<8x32xf32>
    %cst_67 = arith.constant dense<0.000000e+00> : vector<8xf32>
    %155 = vector.multi_reduction <add>, %154, %cst_67 [1] : vector<8x32xf32> to vector<8xf32>
    %156 = vector.shape_cast %155 : vector<8xf32> to vector<8x1xf32>
    %cst_68 = arith.constant 3.200000e+01 : f32
    %157 = vector.broadcast %cst_68 : f32 to vector<8x1xf32>
    %158 = arith.divf %156, %157 : vector<8x1xf32>
    %159 = vector.broadcast %151 : vector<8x1xf32> to vector<8x32xf32>
    %160 = arith.subf %143, %159 : vector<8x32xf32>
    %cst_69 = arith.constant 9.99999974E-6 : f32
    %161 = vector.broadcast %cst_69 : f32 to vector<8x1xf32>
    %162 = arith.addf %158, %161 : vector<8x1xf32>
    %163 = math.rsqrt %162 : vector<8x1xf32>
    %164 = vector.broadcast %163 : vector<8x1xf32> to vector<8x32xf32>
    %165 = arith.mulf %160, %164 : vector<8x32xf32>
    %166 = vector.broadcast %145 : vector<1x32xf32> to vector<8x32xf32>
    %167 = arith.mulf %165, %166 : vector<8x32xf32>
    %168 = vector.broadcast %147 : vector<1x32xf32> to vector<8x32xf32>
    %169 = arith.addf %167, %168 : vector<8x32xf32>
    %170 = arith.truncf %169 : vector<8x32xf32> to vector<8x32xbf16>
    %c1_70 = arith.constant 1 : index
    %c0_71 = arith.constant 0 : index
    %c0_72 = arith.constant 0 : index
    %171 = vector.load %arg4[%c1_70, %c0_71, %c0_72] : memref<2x32x96xbf16, #tpu.memory_space<vmem>>, vector<1x32x96xbf16>
    %172 = vector.shape_cast %171 : vector<1x32x96xbf16> to vector<32x96xbf16>
    %cst_73 = arith.constant dense<0.000000e+00> : vector<8x96xf32>
    %173 = tpu.matmul %170, %172, %cst_73 {dimension_numbers = #tpu.dot_dimension_numbers<[1], [0], [0], [1], [0, 0, 1, 1], [], []>} : vector<8x32xbf16>, vector<32x96xbf16>, vector<8x96xf32> -> vector<8x96xf32>
    %c1_74 = arith.constant 1 : index
    %c0_75 = arith.constant 0 : index
    %c0_76 = arith.constant 0 : index
    %174 = vector.load %arg8[%c1_74, %c0_75, %c0_76] : memref<2x8x128xf32, #tpu.memory_space<vmem>>, vector<1x1x96xf32>
    %175 = vector.shape_cast %174 : vector<1x1x96xf32> to vector<1x96xf32>
    %176 = vector.broadcast %175 : vector<1x96xf32> to vector<8x96xf32>
    %177 = arith.addf %173, %176 : vector<8x96xf32>
    %178 = vector.extract_strided_slice %177 {offsets = [0, 0], sizes = [8, 8], strides = [1, 1]} : vector<8x96xf32> to vector<8x8xf32>
    %179 = vector.extract_strided_slice %177 {offsets = [0, 32], sizes = [8, 8], strides = [1, 1]} : vector<8x96xf32> to vector<8x8xf32>
    %180 = vector.extract_strided_slice %177 {offsets = [0, 64], sizes = [8, 8], strides = [1, 1]} : vector<8x96xf32> to vector<8x8xf32>
    "tpu.trace_start"() <{level = 10 : i32, message = "sd,td->st"}> : () -> ()
    %cst_77 = arith.constant dense<0.000000e+00> : vector<8x8xf32>
    %181 = tpu.matmul %178, %179, %cst_77 {dimension_numbers = #tpu.dot_dimension_numbers<[1], [1], [0], [0], [0, 0, 1, 0], [], []>} : vector<8x8xf32>, vector<8x8xf32>, vector<8x8xf32> -> vector<8x8xf32>
    "tpu.trace_stop"() : () -> ()
    %cst_78 = arith.constant 0.353553385 : f32
    %182 = vector.broadcast %cst_78 : f32 to vector<8x8xf32>
    %183 = arith.mulf %181, %182 : vector<8x8xf32>
    %cst_79 = arith.constant dense<0xFF800000> : vector<8xf32>
    %184 = vector.multi_reduction <maximumf>, %183, %cst_79 [1] : vector<8x8xf32> to vector<8xf32>
    %185 = vector.shape_cast %184 : vector<8xf32> to vector<8x1xf32>
    %186 = vector.broadcast %185 : vector<8x1xf32> to vector<8x8xf32>
    %187 = arith.subf %183, %186 : vector<8x8xf32>
    %188 = math.exp %187 : vector<8x8xf32>
    %cst_80 = arith.constant dense<0.000000e+00> : vector<8xf32>
    %189 = vector.multi_reduction <add>, %188, %cst_80 [1] : vector<8x8xf32> to vector<8xf32>
    %190 = vector.shape_cast %189 : vector<8xf32> to vector<8x1xf32>
    %191 = tpu.reciprocal %190 {approx = true} : vector<8x1xf32> -> vector<8x1xf32>
    %192 = vector.broadcast %191 : vector<8x1xf32> to vector<8x8xf32>
    %193 = arith.mulf %188, %192 : vector<8x8xf32>
    %cst_81 = arith.constant dense<0.000000e+00> : vector<8x8xf32>
    %194 = tpu.matmul %193, %180, %cst_81 {dimension_numbers = #tpu.dot_dimension_numbers<[1], [0], [0], [1], [0, 0, 1, 1], [], []>} : vector<8x8xf32>, vector<8x8xf32>, vector<8x8xf32> -> vector<8x8xf32>
    %195 = vector.extract_strided_slice %177 {offsets = [0, 8], sizes = [8, 8], strides = [1, 1]} : vector<8x96xf32> to vector<8x8xf32>
    %196 = vector.extract_strided_slice %177 {offsets = [0, 40], sizes = [8, 8], strides = [1, 1]} : vector<8x96xf32> to vector<8x8xf32>
    %197 = vector.extract_strided_slice %177 {offsets = [0, 72], sizes = [8, 8], strides = [1, 1]} : vector<8x96xf32> to vector<8x8xf32>
    "tpu.trace_start"() <{level = 10 : i32, message = "sd,td->st"}> : () -> ()
    %cst_82 = arith.constant dense<0.000000e+00> : vector<8x8xf32>
    %198 = tpu.matmul %195, %196, %cst_82 {dimension_numbers = #tpu.dot_dimension_numbers<[1], [1], [0], [0], [0, 0, 1, 0], [], []>} : vector<8x8xf32>, vector<8x8xf32>, vector<8x8xf32> -> vector<8x8xf32>
    "tpu.trace_stop"() : () -> ()
    %cst_83 = arith.constant 0.353553385 : f32
    %199 = vector.broadcast %cst_83 : f32 to vector<8x8xf32>
    %200 = arith.mulf %198, %199 : vector<8x8xf32>
    %cst_84 = arith.constant dense<0xFF800000> : vector<8xf32>
    %201 = vector.multi_reduction <maximumf>, %200, %cst_84 [1] : vector<8x8xf32> to vector<8xf32>
    %202 = vector.shape_cast %201 : vector<8xf32> to vector<8x1xf32>
    %203 = vector.broadcast %202 : vector<8x1xf32> to vector<8x8xf32>
    %204 = arith.subf %200, %203 : vector<8x8xf32>
    %205 = math.exp %204 : vector<8x8xf32>
    %cst_85 = arith.constant dense<0.000000e+00> : vector<8xf32>
    %206 = vector.multi_reduction <add>, %205, %cst_85 [1] : vector<8x8xf32> to vector<8xf32>
    %207 = vector.shape_cast %206 : vector<8xf32> to vector<8x1xf32>
    %208 = tpu.reciprocal %207 {approx = true} : vector<8x1xf32> -> vector<8x1xf32>
    %209 = vector.broadcast %208 : vector<8x1xf32> to vector<8x8xf32>
    %210 = arith.mulf %205, %209 : vector<8x8xf32>
    %cst_86 = arith.constant dense<0.000000e+00> : vector<8x8xf32>
    %211 = tpu.matmul %210, %197, %cst_86 {dimension_numbers = #tpu.dot_dimension_numbers<[1], [0], [0], [1], [0, 0, 1, 1], [], []>} : vector<8x8xf32>, vector<8x8xf32>, vector<8x8xf32> -> vector<8x8xf32>
    %212 = vector.extract_strided_slice %177 {offsets = [0, 16], sizes = [8, 8], strides = [1, 1]} : vector<8x96xf32> to vector<8x8xf32>
    %213 = vector.extract_strided_slice %177 {offsets = [0, 48], sizes = [8, 8], strides = [1, 1]} : vector<8x96xf32> to vector<8x8xf32>
    %214 = vector.extract_strided_slice %177 {offsets = [0, 80], sizes = [8, 8], strides = [1, 1]} : vector<8x96xf32> to vector<8x8xf32>
    "tpu.trace_start"() <{level = 10 : i32, message = "sd,td->st"}> : () -> ()
    %cst_87 = arith.constant dense<0.000000e+00> : vector<8x8xf32>
    %215 = tpu.matmul %212, %213, %cst_87 {dimension_numbers = #tpu.dot_dimension_numbers<[1], [1], [0], [0], [0, 0, 1, 0], [], []>} : vector<8x8xf32>, vector<8x8xf32>, vector<8x8xf32> -> vector<8x8xf32>
    "tpu.trace_stop"() : () -> ()
    %cst_88 = arith.constant 0.353553385 : f32
    %216 = vector.broadcast %cst_88 : f32 to vector<8x8xf32>
    %217 = arith.mulf %215, %216 : vector<8x8xf32>
    %cst_89 = arith.constant dense<0xFF800000> : vector<8xf32>
    %218 = vector.multi_reduction <maximumf>, %217, %cst_89 [1] : vector<8x8xf32> to vector<8xf32>
    %219 = vector.shape_cast %218 : vector<8xf32> to vector<8x1xf32>
    %220 = vector.broadcast %219 : vector<8x1xf32> to vector<8x8xf32>
    %221 = arith.subf %217, %220 : vector<8x8xf32>
    %222 = math.exp %221 : vector<8x8xf32>
    %cst_90 = arith.constant dense<0.000000e+00> : vector<8xf32>
    %223 = vector.multi_reduction <add>, %222, %cst_90 [1] : vector<8x8xf32> to vector<8xf32>
    %224 = vector.shape_cast %223 : vector<8xf32> to vector<8x1xf32>
    %225 = tpu.reciprocal %224 {approx = true} : vector<8x1xf32> -> vector<8x1xf32>
    %226 = vector.broadcast %225 : vector<8x1xf32> to vector<8x8xf32>
    %227 = arith.mulf %222, %226 : vector<8x8xf32>
    %cst_91 = arith.constant dense<0.000000e+00> : vector<8x8xf32>
    %228 = tpu.matmul %227, %214, %cst_91 {dimension_numbers = #tpu.dot_dimension_numbers<[1], [0], [0], [1], [0, 0, 1, 1], [], []>} : vector<8x8xf32>, vector<8x8xf32>, vector<8x8xf32> -> vector<8x8xf32>
    %229 = vector.extract_strided_slice %177 {offsets = [0, 24], sizes = [8, 8], strides = [1, 1]} : vector<8x96xf32> to vector<8x8xf32>
    %230 = vector.extract_strided_slice %177 {offsets = [0, 56], sizes = [8, 8], strides = [1, 1]} : vector<8x96xf32> to vector<8x8xf32>
    %231 = vector.extract_strided_slice %177 {offsets = [0, 88], sizes = [8, 8], strides = [1, 1]} : vector<8x96xf32> to vector<8x8xf32>
    "tpu.trace_start"() <{level = 10 : i32, message = "sd,td->st"}> : () -> ()
    %cst_92 = arith.constant dense<0.000000e+00> : vector<8x8xf32>
    %232 = tpu.matmul %229, %230, %cst_92 {dimension_numbers = #tpu.dot_dimension_numbers<[1], [1], [0], [0], [0, 0, 1, 0], [], []>} : vector<8x8xf32>, vector<8x8xf32>, vector<8x8xf32> -> vector<8x8xf32>
    "tpu.trace_stop"() : () -> ()
    %cst_93 = arith.constant 0.353553385 : f32
    %233 = vector.broadcast %cst_93 : f32 to vector<8x8xf32>
    %234 = arith.mulf %232, %233 : vector<8x8xf32>
    %cst_94 = arith.constant dense<0xFF800000> : vector<8xf32>
    %235 = vector.multi_reduction <maximumf>, %234, %cst_94 [1] : vector<8x8xf32> to vector<8xf32>
    %236 = vector.shape_cast %235 : vector<8xf32> to vector<8x1xf32>
    %237 = vector.broadcast %236 : vector<8x1xf32> to vector<8x8xf32>
    %238 = arith.subf %234, %237 : vector<8x8xf32>
    %239 = math.exp %238 : vector<8x8xf32>
    %cst_95 = arith.constant dense<0.000000e+00> : vector<8xf32>
    %240 = vector.multi_reduction <add>, %239, %cst_95 [1] : vector<8x8xf32> to vector<8xf32>
    %241 = vector.shape_cast %240 : vector<8xf32> to vector<8x1xf32>
    %242 = tpu.reciprocal %241 {approx = true} : vector<8x1xf32> -> vector<8x1xf32>
    %243 = vector.broadcast %242 : vector<8x1xf32> to vector<8x8xf32>
    %244 = arith.mulf %239, %243 : vector<8x8xf32>
    %cst_96 = arith.constant dense<0.000000e+00> : vector<8x8xf32>
    %245 = tpu.matmul %244, %231, %cst_96 {dimension_numbers = #tpu.dot_dimension_numbers<[1], [0], [0], [1], [0, 0, 1, 1], [], []>} : vector<8x8xf32>, vector<8x8xf32>, vector<8x8xf32> -> vector<8x8xf32>
    %246 = tpu.concatenate %194, %211, %228, %245 in 1 : vector<8x8xf32>, vector<8x8xf32>, vector<8x8xf32>, vector<8x8xf32> -> vector<8x32xf32>
    %247 = arith.truncf %246 : vector<8x32xf32> to vector<8x32xbf16>
    %c1_97 = arith.constant 1 : index
    %c0_98 = arith.constant 0 : index
    %c0_99 = arith.constant 0 : index
    %248 = vector.load %arg5[%c1_97, %c0_98, %c0_99] : memref<2x32x32xbf16, #tpu.memory_space<vmem>>, vector<1x32x32xbf16>
    %249 = vector.shape_cast %248 : vector<1x32x32xbf16> to vector<32x32xbf16>
    %cst_100 = arith.constant dense<0.000000e+00> : vector<8x32xf32>
    %250 = tpu.matmul %247, %249, %cst_100 {dimension_numbers = #tpu.dot_dimension_numbers<[1], [0], [0], [1], [0, 0, 1, 1], [], []>} : vector<8x32xbf16>, vector<32x32xbf16>, vector<8x32xf32> -> vector<8x32xf32>
    %c1_101 = arith.constant 1 : index
    %c1_102 = arith.constant 1 : index
    %c0_103 = arith.constant 0 : index
    %251 = vector.load %arg8[%c1_101, %c1_102, %c0_103] : memref<2x8x128xf32, #tpu.memory_space<vmem>>, vector<1x1x32xf32>
    %252 = vector.shape_cast %251 : vector<1x1x32xf32> to vector<1x32xf32>
    %253 = vector.broadcast %252 : vector<1x32xf32> to vector<8x32xf32>
    %254 = arith.addf %250, %253 : vector<8x32xf32>
    %255 = arith.addf %169, %254 : vector<8x32xf32>
    %c1_104 = arith.constant 1 : index
    %c2_105 = arith.constant 2 : index
    %c0_106 = arith.constant 0 : index
    %256 = vector.load %arg8[%c1_104, %c2_105, %c0_106] : memref<2x8x128xf32, #tpu.memory_space<vmem>>, vector<1x1x32xf32>
    %257 = vector.shape_cast %256 : vector<1x1x32xf32> to vector<1x32xf32>
    %c1_107 = arith.constant 1 : index
    %c3_108 = arith.constant 3 : index
    %c0_109 = arith.constant 0 : index
    %258 = vector.load %arg8[%c1_107, %c3_108, %c0_109] : memref<2x8x128xf32, #tpu.memory_space<vmem>>, vector<1x1x32xf32>
    %259 = vector.shape_cast %258 : vector<1x1x32xf32> to vector<1x32xf32>
    %cst_110 = arith.constant dense<0.000000e+00> : vector<8xf32>
    %260 = vector.multi_reduction <add>, %255, %cst_110 [1] : vector<8x32xf32> to vector<8xf32>
    %261 = vector.shape_cast %260 : vector<8xf32> to vector<8x1xf32>
    %cst_111 = arith.constant 3.200000e+01 : f32
    %262 = vector.broadcast %cst_111 : f32 to vector<8x1xf32>
    %263 = arith.divf %261, %262 : vector<8x1xf32>
    %264 = vector.broadcast %263 : vector<8x1xf32> to vector<8x32xf32>
    %265 = arith.subf %255, %264 : vector<8x32xf32>
    %266 = arith.mulf %265, %265 : vector<8x32xf32>
    %cst_112 = arith.constant dense<0.000000e+00> : vector<8xf32>
    %267 = vector.multi_reduction <add>, %266, %cst_112 [1] : vector<8x32xf32> to vector<8xf32>
    %268 = vector.shape_cast %267 : vector<8xf32> to vector<8x1xf32>
    %cst_113 = arith.constant 3.200000e+01 : f32
    %269 = vector.broadcast %cst_113 : f32 to vector<8x1xf32>
    %270 = arith.divf %268, %269 : vector<8x1xf32>
    %271 = vector.broadcast %263 : vector<8x1xf32> to vector<8x32xf32>
    %272 = arith.subf %255, %271 : vector<8x32xf32>
    %cst_114 = arith.constant 9.99999974E-6 : f32
    %273 = vector.broadcast %cst_114 : f32 to vector<8x1xf32>
    %274 = arith.addf %270, %273 : vector<8x1xf32>
    %275 = math.rsqrt %274 : vector<8x1xf32>
    %276 = vector.broadcast %275 : vector<8x1xf32> to vector<8x32xf32>
    %277 = arith.mulf %272, %276 : vector<8x32xf32>
    %278 = vector.broadcast %257 : vector<1x32xf32> to vector<8x32xf32>
    %279 = arith.mulf %277, %278 : vector<8x32xf32>
    %280 = vector.broadcast %259 : vector<1x32xf32> to vector<8x32xf32>
    %281 = arith.addf %279, %280 : vector<8x32xf32>
    %282 = arith.truncf %281 : vector<8x32xf32> to vector<8x32xbf16>
    %c1_115 = arith.constant 1 : index
    %c0_116 = arith.constant 0 : index
    %c0_117 = arith.constant 0 : index
    %283 = vector.load %arg6[%c1_115, %c0_116, %c0_117] : memref<2x32x64xbf16, #tpu.memory_space<vmem>>, vector<1x32x64xbf16>
    %284 = vector.shape_cast %283 : vector<1x32x64xbf16> to vector<32x64xbf16>
    %cst_118 = arith.constant dense<0.000000e+00> : vector<8x64xf32>
    %285 = tpu.matmul %282, %284, %cst_118 {dimension_numbers = #tpu.dot_dimension_numbers<[1], [0], [0], [1], [0, 0, 1, 1], [], []>} : vector<8x32xbf16>, vector<32x64xbf16>, vector<8x64xf32> -> vector<8x64xf32>
    %c1_119 = arith.constant 1 : index
    %c4_120 = arith.constant 4 : index
    %c0_121 = arith.constant 0 : index
    %286 = vector.load %arg8[%c1_119, %c4_120, %c0_121] : memref<2x8x128xf32, #tpu.memory_space<vmem>>, vector<1x1x64xf32>
    %287 = vector.shape_cast %286 : vector<1x1x64xf32> to vector<1x64xf32>
    %288 = vector.broadcast %287 : vector<1x64xf32> to vector<8x64xf32>
    %289 = arith.addf %285, %288 : vector<8x64xf32>
    %cst_122 = arith.constant 0.000000e+00 : f32
    %290 = vector.broadcast %cst_122 : f32 to vector<8x64xf32>
    %291 = arith.maximumf %289, %290 : vector<8x64xf32>
    %292 = arith.truncf %291 : vector<8x64xf32> to vector<8x64xbf16>
    %c1_123 = arith.constant 1 : index
    %c0_124 = arith.constant 0 : index
    %c0_125 = arith.constant 0 : index
    %293 = vector.load %arg7[%c1_123, %c0_124, %c0_125] : memref<2x64x32xbf16, #tpu.memory_space<vmem>>, vector<1x64x32xbf16>
    %294 = vector.shape_cast %293 : vector<1x64x32xbf16> to vector<64x32xbf16>
    %cst_126 = arith.constant dense<0.000000e+00> : vector<8x32xf32>
    %295 = tpu.matmul %292, %294, %cst_126 {dimension_numbers = #tpu.dot_dimension_numbers<[1], [0], [0], [1], [0, 0, 1, 1], [], []>} : vector<8x64xbf16>, vector<64x32xbf16>, vector<8x32xf32> -> vector<8x32xf32>
    %c1_127 = arith.constant 1 : index
    %c5_128 = arith.constant 5 : index
    %c0_129 = arith.constant 0 : index
    %296 = vector.load %arg8[%c1_127, %c5_128, %c0_129] : memref<2x8x128xf32, #tpu.memory_space<vmem>>, vector<1x1x32xf32>
    %297 = vector.shape_cast %296 : vector<1x1x32xf32> to vector<1x32xf32>
    %298 = vector.broadcast %297 : vector<1x32xf32> to vector<8x32xf32>
    %299 = arith.addf %295, %298 : vector<8x32xf32>
    %300 = arith.addf %281, %299 : vector<8x32xf32>
    %c1_130 = arith.constant 1 : index
    %c6_131 = arith.constant 6 : index
    %c0_132 = arith.constant 0 : index
    %301 = vector.load %arg8[%c1_130, %c6_131, %c0_132] : memref<2x8x128xf32, #tpu.memory_space<vmem>>, vector<1x1x32xf32>
    %302 = vector.shape_cast %301 : vector<1x1x32xf32> to vector<1x32xf32>
    %c1_133 = arith.constant 1 : index
    %c7_134 = arith.constant 7 : index
    %c0_135 = arith.constant 0 : index
    %303 = vector.load %arg8[%c1_133, %c7_134, %c0_135] : memref<2x8x128xf32, #tpu.memory_space<vmem>>, vector<1x1x32xf32>
    %304 = vector.shape_cast %303 : vector<1x1x32xf32> to vector<1x32xf32>
    %cst_136 = arith.constant dense<0.000000e+00> : vector<8xf32>
    %305 = vector.multi_reduction <add>, %300, %cst_136 [1] : vector<8x32xf32> to vector<8xf32>
    %306 = vector.shape_cast %305 : vector<8xf32> to vector<8x1xf32>
    %cst_137 = arith.constant 3.200000e+01 : f32
    %307 = vector.broadcast %cst_137 : f32 to vector<8x1xf32>
    %308 = arith.divf %306, %307 : vector<8x1xf32>
    %309 = vector.broadcast %308 : vector<8x1xf32> to vector<8x32xf32>
    %310 = arith.subf %300, %309 : vector<8x32xf32>
    %311 = arith.mulf %310, %310 : vector<8x32xf32>
    %cst_138 = arith.constant dense<0.000000e+00> : vector<8xf32>
    %312 = vector.multi_reduction <add>, %311, %cst_138 [1] : vector<8x32xf32> to vector<8xf32>
    %313 = vector.shape_cast %312 : vector<8xf32> to vector<8x1xf32>
    %cst_139 = arith.constant 3.200000e+01 : f32
    %314 = vector.broadcast %cst_139 : f32 to vector<8x1xf32>
    %315 = arith.divf %313, %314 : vector<8x1xf32>
    %316 = vector.broadcast %308 : vector<8x1xf32> to vector<8x32xf32>
    %317 = arith.subf %300, %316 : vector<8x32xf32>
    %cst_140 = arith.constant 9.99999974E-6 : f32
    %318 = vector.broadcast %cst_140 : f32 to vector<8x1xf32>
    %319 = arith.addf %315, %318 : vector<8x1xf32>
    %320 = math.rsqrt %319 : vector<8x1xf32>
    %321 = vector.broadcast %320 : vector<8x1xf32> to vector<8x32xf32>
    %322 = arith.mulf %317, %321 : vector<8x32xf32>
    %323 = vector.broadcast %302 : vector<1x32xf32> to vector<8x32xf32>
    %324 = arith.mulf %322, %323 : vector<8x32xf32>
    %325 = vector.broadcast %304 : vector<1x32xf32> to vector<8x32xf32>
    %326 = arith.addf %324, %325 : vector<8x32xf32>
    %cst_141 = arith.constant 1.250000e-01 : f32
    %327 = vector.broadcast %cst_141 : f32 to vector<1x8xf32>
    %cst_142 = arith.constant dense<0.000000e+00> : vector<1x32xf32>
    %328 = tpu.matmul %327, %326, %cst_142 {dimension_numbers = #tpu.dot_dimension_numbers<[1], [0], [0], [1], [0, 0, 1, 1], [], []>} : vector<1x8xf32>, vector<8x32xf32>, vector<1x32xf32> -> vector<1x32xf32>
    %c0_143 = arith.constant 0 : index
    %c0_144 = arith.constant 0 : index
    %329 = vector.load %arg9[%c0_143, %c0_144] : memref<40x128xf32, #tpu.memory_space<vmem>>, vector<32x128xf32>
    %cst_145 = arith.constant dense<0.000000e+00> : vector<1x128xf32>
    %330 = tpu.matmul %328, %329, %cst_145 {dimension_numbers = #tpu.dot_dimension_numbers<[1], [0], [0], [1], [0, 0, 1, 1], [], []>} : vector<1x32xf32>, vector<32x128xf32>, vector<1x128xf32> -> vector<1x128xf32>
    %c32 = arith.constant 32 : index
    %c0_146 = arith.constant 0 : index
    %331 = vector.load %arg9[%c32, %c0_146] : memref<40x128xf32, #tpu.memory_space<vmem>>, vector<1x128xf32>
    %332 = arith.addf %330, %331 : vector<1x128xf32>
    %c0_147 = arith.constant 0 : index
    %c0_148 = arith.constant 0 : index
    %c0_149 = arith.constant 0 : index
    %333 = vector.load %arg10[%c0_147, %c0_148, %c0_149] : memref<1x1x128xf32, #tpu.memory_space<vmem>>, vector<1x1x128xf32>
    %334 = vector.shape_cast %333 : vector<1x1x128xf32> to vector<1x128xf32>
    %335 = vector.shape_cast %332 : vector<1x128xf32> to vector<1x1x128xf32>
    tpu.vector_store %arg10[%c0_147, %c0_148, %c0_149], %335 {strides = array<i32>} : memref<1x1x128xf32, #tpu.memory_space<vmem>>, vector<1x1x128xf32>,
    return
  }
  func.func @transform_0(%arg0: i32) -> (i32, i32) {
    %c0_i32 = arith.constant 0 : i32
    %c0_i32_0 = arith.constant 0 : i32
    return %arg0, %c0_i32 : i32, i32
  }
  func.func @transform_1(%arg0: i32) -> (i32, i32) {
    %c0_i32 = arith.constant 0 : i32
    %c0_i32_0 = arith.constant 0 : i32
    %c0_i32_1 = arith.constant 0 : i32
    return %c0_i32, %c0_i32_0 : i32, i32
  }
  func.func @transform_2(%arg0: i32) -> (i32, i32) {
    %c0_i32 = arith.constant 0 : i32
    %c0_i32_0 = arith.constant 0 : i32
    %c0_i32_1 = arith.constant 0 : i32
    return %c0_i32, %c0_i32_0 : i32, i32
  }
  func.func @transform_3(%arg0: i32) -> (i32, i32, i32) {
    %c0_i32 = arith.constant 0 : i32
    %c0_i32_0 = arith.constant 0 : i32
    %c0_i32_1 = arith.constant 0 : i32
    %c0_i32_2 = arith.constant 0 : i32
    return %c0_i32, %c0_i32_0, %c0_i32_1 : i32, i32, i32
  }
  func.func @transform_4(%arg0: i32) -> (i32, i32, i32) {
    %c0_i32 = arith.constant 0 : i32
    %c0_i32_0 = arith.constant 0 : i32
    %c0_i32_1 = arith.constant 0 : i32
    %c0_i32_2 = arith.constant 0 : i32
    return %c0_i32, %c0_i32_0, %c0_i32_1 : i32, i32, i32
  }
  func.func @transform_5(%arg0: i32) -> (i32, i32, i32) {
    %c0_i32 = arith.constant 0 : i32
    %c0_i32_0 = arith.constant 0 : i32
    %c0_i32_1 = arith.constant 0 : i32
    %c0_i32_2 = arith.constant 0 : i32
    return %c0_i32, %c0_i32_0, %c0_i32_1 : i32, i32, i32
  }
  func.func @transform_6(%arg0: i32) -> (i32, i32, i32) {
    %c0_i32 = arith.constant 0 : i32
    %c0_i32_0 = arith.constant 0 : i32
    %c0_i32_1 = arith.constant 0 : i32
    %c0_i32_2 = arith.constant 0 : i32
    return %c0_i32, %c0_i32_0, %c0_i32_1 : i32, i32, i32
  }
  func.func @transform_7(%arg0: i32) -> (i32, i32, i32) {
    %c0_i32 = arith.constant 0 : i32
    %c0_i32_0 = arith.constant 0 : i32
    %c0_i32_1 = arith.constant 0 : i32
    %c0_i32_2 = arith.constant 0 : i32
    return %c0_i32, %c0_i32_0, %c0_i32_1 : i32, i32, i32
  }
  func.func @transform_8(%arg0: i32) -> (i32, i32) {
    %c0_i32 = arith.constant 0 : i32
    %c0_i32_0 = arith.constant 0 : i32
    %c0_i32_1 = arith.constant 0 : i32
    return %c0_i32, %c0_i32_0 : i32, i32
  }
  func.func @transform_9(%arg0: i32) -> (i32, i32, i32) {
    %c0_i32 = arith.constant 0 : i32
    %c0_i32_0 = arith.constant 0 : i32
    %c0_i32_1 = arith.constant 0 : i32
    return %arg0, %c0_i32, %c0_i32_0 : i32, i32, i32
  }
}

</mosaic_0001>

<bundles_post_ra>
// kernel: net_forward.1
= control target key start
LH: loop header
LB: loop body
LE: loop exit
PB: predicated region body
PF: predicated region fallthrough
CT: control target
= control target key end

     0   :  { %14 = vsyncpa [#allocation3], 0  ;;  %s3822_s0 = inlined_call_operand.vmem [shape: s32[16,1], index: 0, kind: input, shape index: {}]   ;;  %s3823_s1 = inlined_call_operand.vmem [shape: f32[8,32], index: 1, kind: input, shape index: {}]   ;;  %s3824_s2 = inlined_call_operand.vmem [shape: bf16[128,32], index: 2, kind: input, shape index: {}]   ;;  %s3825_s3 = inlined_call_operand.vmem [shape: bf16[2,32,96], index: 3, kind: input, shape index: {}]   ;;  %s3826_s4 = inlined_call_operand.vmem [shape: bf16[2,32,32], index: 4, kind: input, shape index: {}]   ;;  %s3827_s5 = inlined_call_operand.vmem [shape: bf16[2,32,64], index: 5, kind: input, shape index: {}]   ;;  %s3828_s6 = inlined_call_operand.vmem [shape: bf16[2,64,32], index: 6, kind: input, shape index: {}]   ;;  %s3829_s7 = inlined_call_operand.vmem [shape: f32[2,8,128], index: 7, kind: input, shape index: {}]   ;;  %s3830_s8 = inlined_call_operand.vmem [shape: f32[40,128], index: 8, kind: input, shape index: {}]   ;;  %s3831_s9 = inlined_call_operand.hbm [shape: f32[2,1,128], index: 9, kind: output, shape index: {}]  }
   0x1   :  { %16 = vsyncpa [#allocation3 + $0x1], 0  ;;  %s3340_s30 = smov 0   ;;  %s3342_s10 = smov 0  }
   0x2   :  { %s3344_s11 = smov 0   ;;  %s3346_s12 = smov 0  }
   0x3 LB: > { %s3361_s13 = sadd.s32 4294967295, %s3267_s12   ;;  %s2690_s14 = sadd.s32 4294967294, %s3267_s12   ;;  %s3267_s12 = sphi %s3346_s12, %s3857_s12   ;;  %s3263_s11 = sphi %s3344_s11, %s3856_s11   ;;  %s3259_s10 = sphi %s3342_s10, %s3855_s10   ;;  %s3255_s30 = sphi %s3340_s30, %s3854_s30  }
   0x4   : > { %s3365_s15 = sadd.s32 1, %s3267_s12   ;;  %s223_s16 = sadd.s32 1, %s3263_s11 }
   0x5   : > { %s220_s17 = ssub.s32 %s3267_s12, %s3365_s15  ;;  %p233_p0 = scmp.ne.s32.totalorder %s3263_s11, %s3259_s10 }
   0x6   : > { %p221_p1 = scmp.eq.s32.totalorder %s220_s17, 0  ;;  %p234_p2 = scmp.eq.s32.totalorder %s3361_s13, 1 }
   0x7   : > { %p239_p3 = scmp.ne.s32.totalorder %s3259_s10, %s3255_s30  ;;  %p240_p4 = scmp.eq.s32.totalorder %s2690_s14, 1 }
   0x8   : > { %s3376_s18 = scalar_select %p221_p1, %s3263_s11, %s223_s16  }
   0x9   : > { %p3378_p5 = por %p234_p2, %p233_p0  ;;  %p3382_p6 = por %p240_p4, %p239_p3 }
   0xa   : > { %p2693_p7 = scmp.ge.s32.totalorder %s3267_s12, 1  ;;  %p289_p8 = scmp.lt.s32.totalorder %s3267_s12, 3 }
   0xc   : > { %p290_p9 = pnand %p2693_p7, %p289_p8 }
   0xd   : > { %p323_p10 = scmp.lt.s32.totalorder (!%p290_p9), %s3361_s13, 1  ;;  %v3137_v0 = vld [vmem:[%s3824_s2] sm:$0xff] (!%p290_p9)   ;;  %v3269_v1 = vmov (!%p290_p9), 0   ;;  %v3270_v2 = vmov (!%p290_p9), 0.0   ;;  %v3138_v3 = vld [vmem:[%s3824_s2 + $0x8] sm:$0xff] (!%p290_p9)   ;;  %v3139_v5 = vld [vmem:[%s3824_s2 + $0x10] sm:$0xff] (!%p290_p9)   ;;  %v329_v11 = vlaneseq (!%p290_p9) }
   0xe   : > { %293 = sbr.rel (%p290_p9) target bundleno = 6878 (0x1ade), region = 56  ;;  %3136 = vset.pattern.permute.xlu0 (!%p290_p9), %v3269_v1  ;;  %2883 = vmatprep.subr.bf16.mxu0 (!%p290_p9), %v3270_v2  ;;  %v3140_v6 = vld [vmem:[%s3824_s2 + $0x18] sm:$0xff] (!%p290_p9)   ;;  %vm3271_vm0 = vmmov (!%p290_p9), 0   ;;  %v3141_v7 = vld [vmem:[%s3824_s2 + $0x20] sm:$0xff] (!%p290_p9)   ;;  %v3142_v8 = vld [vmem:[%s3824_s2 + $0x28] sm:$0xff] (!%p290_p9)   ;;  %vm467_vm3 = vcmask (!%p290_p9), 261120  }
   0xf   : > { %2884 = vmatpush3.bf16.msra.mxu0 (!%p290_p9), %v3137_v0  ;;  %2903 = vmatprep.subr.bf16.mxu1 (!%p290_p9), %v3270_v2  ;;  %v3143_v9 = vld [vmem:[%s3824_s2 + $0x30] sm:$0xff] (!%p290_p9)   ;;  %v3144_v10 = vld [vmem:[%s3824_s2 + $0x38] sm:$0xff] (!%p290_p9)   ;;  %v330_v12 = vand.u32 (!%p290_p9), 127, %v329_v11  ;;  %v3272_v14 = vmov (!%p290_p9), 1.0|1.0   ;;  %v3145_v15 = vld [vmem:[%s3825_s3] sm:$0xff] (!%p290_p9)  }
  0x10   : > { %2885 = vmatprep.subr.bf16.mxu0 (!%p290_p9), %v3270_v2  ;;  %2899 = vmatprep.mubr.msk.bf16.mxu0 (!%p290_p9), %vm3271_vm0, %v3270_v2  ;;  %v3146_v16 = vld [vmem:[%s3825_s3 + $0x8] sm:$0xff] (!%p290_p9)   ;;  %v443_v18 = vld [vmem:[%s3823_s1] sm:$0xff] (!%p290_p9)  ;;  %s3835_s27 = smov (!%p290_p9), 64   ;;  %s3275_s28 = smov (!%p290_p9), 120   ;;  %vm514_vm4 = vcmask (!%p290_p9), 64512   ;;  %vm1188_vm5 = vcmask (!%p290_p9), 130048  }
  0x11   : > { %2907 = vmatprep.mubr.msk.bf16.mxu1 (!%p290_p9), %vm3271_vm0, %v3270_v2  ;;  %2904 = vmatpush3.bf16.msra.mxu1 (!%p290_p9), %v3145_v15  ;;  %v2706_v25 = vld [vmem:[%s3829_s7] ss:$0 sm:$0xff] (!%p290_p9)  ;;  %s3836_s14 = smov (!%p290_p9), 56   ;;  %s3278_s16 = smov (!%p290_p9), 112   ;;  %vm1190_vm6 = vcmask (!%p290_p9), 195584   ;;  %vm1388_vm7 = vcmask (!%p290_p9), 523264  }
  0x12   : > { %2905 = vmatprep.subr.bf16.mxu1 (!%p290_p9), %v3270_v2  ;;  %s3837_s17 = smov (!%p290_p9), 72   ;;  %s3841_s21 = smov (!%p290_p9), 104  }
  0x13   : > { %2886 = vmatpush3.bf16.msra.mxu0 (!%p290_p9), %v3138_v3  ;;  %s3840_s22 = smov (!%p290_p9), 80   ;;  %s3832_s24 = smov (!%p290_p9), 8  }
  0x14   : > { %2887 = vmatprep.subr.bf16.mxu0 (!%p290_p9), %v3270_v2  ;;  %s3834_s25 = smov (!%p290_p9), 48  }
  0x15   : > { %s324_s23 = scalar_select %p323_p10, %s3361_s13, 1  ;;  %2906 = vmatpush3.bf16.msra.mxu1 %v3146_v16 }
  0x16   : > { %2911 = vmatprep.subr.mxu1 %v3270_v2 }
  0x17   : > { %s2694_s26 = sshll.u32 %s324_s23, 3  ;;  %2888 = vmatpush3.bf16.msra.mxu0 %v3139_v5  ;;  %s3833_s23 = smov 40  }
  0x18   : > { %s326_s29 = scalar_lea.vmem %s3822_s0, %s2694_s26  ;;  %2889 = vmatprep.subr.bf16.mxu0 %v3270_v2  ;;  %s3273_s26 = smov 96  }
  0x19   : > { %v328_v4 = vld [vmem:[%s326_s29] sm:$0xff]  ;;  %s3276_s29 = smov 88  }
  0x1a   : > { %332 = vperm.xlu0 %3136, %v328_v4  }
  0x1b   : > { %2890 = vmatpush3.bf16.msra.mxu0 %v3140_v6 }
  0x1c   : > { %2891 = vmatprep.subr.bf16.mxu0 %v3270_v2 }
  0x1f   : > { %2892 = vmatpush3.bf16.msra.mxu0 %v3141_v7 }
  0x20   : > { %2893 = vmatprep.subr.bf16.mxu0 %v3270_v2 }
  0x23   : > { %2894 = vmatpush3.bf16.msra.mxu0 %v3142_v8 }
  0x24   : > { %2895 = vmatprep.subr.bf16.mxu0 %v3270_v2 }
  0x27   : > { %2896 = vmatpush3.bf16.msra.mxu0 %v3143_v9 }
  0x28   : > { %2897 = vmatprep.subr.bf16.mxu0 %v3270_v2 }
  0x2b   : > { %2898 = vmatpush3.bf16.msra.mxu0 %v3144_v10 }
  0x2c   : > { %2941 = vmatprep.subr.mxu0 %v3270_v2 }
  0x99   : > { %v333_v13 = vpop.permute.xlu0 %332 }
  0x9a   : > { %vm334_vm1 = vcmp.eq.s32.totalorder %v333_v13, %v330_v12 }
  0x9b   : > { %vm2704_vm2 = vmpackc.low %vm334_vm1, %vm334_vm1 }
  0x9c   : > { %2900 = vmatmul.mubr.msk.bf16.vlgmr.msra.gmra.mrb[0].mxu0 %vm2704_vm2, %v3272_v14 }
  0x9d   : > { %2943 = vmatprep.mubr.msk.f32.mxu0 %vm3271_vm0, %v3270_v2 }
 0x16f   : > { %v436_v17 = vpop.f32.mrb[0].mxu0 }
 0x170   : > { %v442_v19 = vmul.f32 5.656854, %v436_v17  ;;  %v2901_v20 = vpop.f32.mrb[1].mxu0 }
 0x171   : > { %v439_v21 = vpop.f32.mrb[2].mxu0 }
 0x172   : > { %v3444_v22 = vadd.f32 %v443_v18, %v442_v19  ;;  %v2902_v23 = vpop.f32.mrb[3].mxu0 }
 0x174   : > { %v445_v24 = vpack.c.bf16 %v3444_v22, %v3444_v22 }
 0x176   : > { %2908 = vmatmul.mubr.msk.bf16.vlgmr.msra.gmra.mrb[0].mxu1 %vm467_vm3, %v445_v24 }
 0x177   : > { %2913 = vmatprep.mubr.msk.f32.mxu1 %vm3271_vm0, %v3270_v2 }
 0x249   : > { %v505_v26 = vpop.f32.mrb[0].mxu1 }
 0x24a   : > { %v3454_v27 = vadd.f32 %v2706_v25, %v505_v26  ;;  %v2909_v28 = vpop.f32.mrb[1].mxu1 }
 0x24b   : > { %v508_v29 = vpop.f32.mrb[2].mxu1 }
 0x24c   : > { %512 = vrot.lane.b32.xlu0 %v3454_v27, %s3273_s26  ;;  %v2910_v30 = vpop.f32.mrb[3].mxu1 }
 0x250   : > { %601 = vrot.lane.b32.xlu0 %v3454_v27, %s3835_s27  ;;  %s3844_s27 = smov 104  }
 0x254   : > { %677 = vrot.lane.b32.xlu0 %v3454_v27, %s3275_s28 }
 0x2be   : > { %v513_v31 = vpop.permute.xlu0 %512 }
 0x2bf   : > { %2912 = vmatpush3.xpose.msk.msra.mxu1 %vm514_vm4, %v513_v31 }
 0x2c0   : > { %2916 = vmatprep.subr.mxu1 %v3270_v2 }
 0x2c2   : > { %2914 = vmatmul.mubr.msk.f32.vlgmr.msra.gmra.mrb[4].mxu1 %vm514_vm4, %v3454_v27  ;;  %v602_v32 = vpop.permute.xlu0 %601 }
 0x2c3   : > { %2917 = vmatpush3.msra.mxu1 %v602_v32  ;;  %2918 = vmatprep.mubr.msk.f32.mxu1 %vm3271_vm0, %v3270_v2 }
 0x2c4   : > { %2921 = vmatprep.subr.mxu1 %v3270_v2 }
 0x2c6   : > { %v678_v46 = vpop.permute.xlu0 %677 }
 0x395   : > { %v585_v33 = vpop.f32.mrb[4].mxu1 }
 0x396   : > { %v589_v34 = vmul.f32 0.35355338, %v585_v33  ;;  %v2915_v35 = vpop.f32.mrb[5].mxu1  ;;  %v3148_v33 = vld [vmem:[%s3826_s4 + $0x8] sm:$0xff]  }
 0x398   : > { %v590_v36 = vsel %vm514_vm4, %v589_v34, -inf }
 0x399   : > { %591 = vmax.xlane.f32.xlu1 %v590_v36 }
 0x426   : > { %v592_v37 = vpop.xlane.xlu1 %591 }
 0x427   : > { %v593_v38 = vsub.f32 %v589_v34, %v592_v37 }
 0x429   : > { %v594_v39 = vmul.f32 1.442695, %v593_v38 }
 0x42b   : > { %3165 = vpow2.f32 %v594_v39 }
 0x435   : > { %v3166_v40 = vpop.eup %3165 }
 0x436   : > { %v596_v41 = vsel %vm514_vm4, %v3166_v40, 0.0 }
 0x437   : > { %597 = vadd.xlane.f32.xlu1 %v596_v41 }
 0x448   : > { %679 = vrot.lane.b32.xlu1 %v3454_v27, %s3276_s29 }
 0x4c4   : > { %v598_v42 = vpop.xlane.xlu1 %597 }
 0x4c5   : > { %3167 = vrcp.f32 %v598_v42 }
 0x4c8   : > { %v680_v45 = vpop.permute.xlu1 %679 }
 0x4cf   : > { %v3168_v43 = vpop.eup %3167 }
 0x4d0   : > { %v600_v44 = vmul.f32 %v3168_v43, %v3166_v40 }
 0x4d2   : > { %2919 = vmatmul.mubr.msk.f32.vlgmr.msra.gmra.mrb[6].mxu1 %vm514_vm4, %v600_v44 }
 0x4d3   : > { %2922 = vmatpush3.xpose.msk.msra.mxu1 %vm514_vm4, %v680_v45  ;;  %2923 = vmatprep.mubr.msk.f32.mxu1 %vm3271_vm0, %v3270_v2  ;;  %v2722_v45 = vld [vmem:[%s3829_s7 + $0x1] ss:$0 sm:$0xff] }
 0x4d4   : > { %2926 = vmatprep.subr.mxu1 %v3270_v2 }
 0x4d6   : > { %2924 = vmatmul.mubr.msk.f32.vlgmr.msra.gmra.mrb[8].mxu1 %vm514_vm4, %v678_v46 }
 0x4d7   : > { %2928 = vmatprep.mubr.msk.f32.mxu1 %vm3271_vm0, %v3270_v2 }
 0x5a5   : > { %v3481_v47 = vpop.f32.mrb[6].mxu1 }
 0x5a6   : > { %v2920_v48 = vpop.f32.mrb[7].mxu1 }
 0x5a9   : > { %v751_v49 = vpop.f32.mrb[8].mxu1 }
 0x5aa   : > { %v755_v50 = vmul.f32 0.35355338, %v751_v49  ;;  %v2925_v51 = vpop.f32.mrb[9].mxu1 }
 0x5ac   : > { %v756_v52 = vsel %vm514_vm4, %v755_v50, -inf }
 0x5ad   : > { %757 = vmax.xlane.f32.xlu0 %v756_v52 }
 0x5c3   : > { %767 = vrot.lane.b32.xlu0 %v3454_v27, %s3836_s14  ;;  %s3839_s14 = smov 16  }
 0x5c7   : > { %843 = vrot.lane.b32.xlu0 %v3454_v27, %s3278_s16 }
 0x5cb   : > { %1011 = vrot.lane.b32.xlu0 %v3454_v27, %s3837_s17  ;;  %s3838_s17 = smov 24  }
 0x5cf   : > { %1009 = vrot.lane.b32.xlu0 %v3454_v27, %s3841_s21 }
 0x63a   : > { %v758_v53 = vpop.xlane.xlu0 %757 }
 0x63b   : > { %v759_v54 = vsub.f32 %v755_v50, %v758_v53 }
 0x63d   : > { %v760_v55 = vmul.f32 1.442695, %v759_v54 }
 0x63e   : > { %v768_v56 = vpop.permute.xlu0 %767 }
 0x63f   : > { %3169 = vpow2.f32 %v760_v55  ;;  %2927 = vmatpush3.msra.mxu1 %v768_v56 }
 0x640   : > { %2931 = vmatprep.subr.mxu1 %v3270_v2 }
 0x642   : > { %v844_v57 = vpop.permute.xlu0 %843 }
 0x646   : > { %v1012_v58 = vpop.permute.xlu0 %1011 }
 0x647   : > { %2942 = vmatpush3.xpose.msk.msra.mxu0 %vm514_vm4, %v1012_v58  ;;  %v3149_v58 = vld [vmem:[%s3827_s5] sm:$0xff]  }
 0x648   : > { %2951 = vmatprep.subr.bf16.mxu0 %v3270_v2 }
 0x649   : > { %v3170_v59 = vpop.eup %3169 }
 0x64a   : > { %v1010_v60 = vpop.permute.xlu0 %1009  ;;  %v762_v61 = vsel %vm514_vm4, %v3170_v59, 0.0 }
 0x64b   : > { %763 = vadd.xlane.f32.xlu1 %v762_v61  ;;  %2944 = vmatmul.mubr.msk.f32.vlgmr.msra.gmra.mrb[4].mxu0 %vm514_vm4, %v1010_v60  ;;  %v3152_v60 = vld [vmem:[%s3828_s6 + $0x8] sm:$0xff]  }
 0x64c   : > { %2955 = vmatprep.mubr.msk.bf16.mxu0 %vm3271_vm0, %v3270_v2 }
 0x65c   : > { %845 = vrot.lane.b32.xlu1 %v3454_v27, %s3840_s22 }
 0x6d8   : > { %v764_v62 = vpop.xlane.xlu1 %763 }
 0x6d9   : > { %3171 = vrcp.f32 %v764_v62 }
 0x6dc   : > { %v846_v1 = vpop.permute.xlu1 %845 }
 0x6e3   : > { %v3172_v63 = vpop.eup %3171 }
 0x6e4   : > { %v766_v0 = vmul.f32 %v3172_v63, %v3170_v59  ;;  %v3150_v59 = vld [vmem:[%s3827_s5 + $0x8] sm:$0xff]  }
 0x6e6   : > { %2929 = vmatmul.mubr.msk.f32.vlgmr.msra.gmra.mrb[10].mxu1 %vm514_vm4, %v766_v0 }
 0x6e7   : > { %2932 = vmatpush3.xpose.msk.msra.mxu1 %vm514_vm4, %v846_v1  ;;  %2933 = vmatprep.mubr.msk.f32.mxu1 %vm3271_vm0, %v3270_v2  ;;  %v2726_v1 = vld [vmem:[%s3829_s7 + $0x2] ss:$0 sm:$0xff] }
 0x6e8   : > { %2936 = vmatprep.subr.mxu1 %v3270_v2 }
 0x6ea   : > { %2934 = vmatmul.mubr.msk.f32.vlgmr.msra.gmra.mrb[12].mxu1 %vm514_vm4, %v844_v57 }
 0x6eb   : > { %2938 = vmatprep.mubr.msk.f32.mxu1 %vm3271_vm0, %v3270_v2 }
 0x71e   : > { %v1083_v3 = vpop.f32.mrb[4].mxu0 }
 0x71f   : > { %v1087_v4 = vmul.f32 0.35355338, %v1083_v3  ;;  %v2945_v5 = vpop.f32.mrb[5].mxu0 }
 0x721   : > { %v1088_v6 = vsel %vm514_vm4, %v1087_v4, -inf }
 0x722   : > { %1089 = vmax.xlane.f32.xlu0 %v1088_v6 }
 0x7af   : > { %v1090_v7 = vpop.xlane.xlu0 %1089 }
 0x7b0   : > { %v1091_v8 = vsub.f32 %v1087_v4, %v1090_v7  ;;  %v2727_v4 = vld [vmem:[%s3829_s7 + $0x3] ss:$0 sm:$0xff] }
 0x7b2   : > { %v1092_v9 = vmul.f32 1.442695, %v1091_v8  ;;  %v3153_v8 = vld [vmem:[%s3828_s6 + $0x10] sm:$0xff]  }
 0x7b4   : > { %3173 = vpow2.f32 %v1092_v9  ;;  %v3154_v9 = vld [vmem:[%s3828_s6 + $0x18] sm:$0xff]  }
 0x7b9   : > { %v839_v10 = vpop.f32.mrb[10].mxu1 }
 0x7ba   : > { %v2930_v11 = vpop.f32.mrb[11].mxu1 }
 0x7bd   : > { %v917_v12 = vpop.f32.mrb[12].mxu1 }
 0x7be   : > { %v921_v13 = vmul.f32 0.35355338, %v917_v12  ;;  %v2935_v14 = vpop.f32.mrb[13].mxu1  ;;  %v3174_v16 = vpop.eup %3173 }
 0x7bf   : > { %v1094_v17 = vsel %vm514_vm4, %v3174_v16, 0.0 }
 0x7c0   : > { %v922_v15 = vsel %vm514_vm4, %v921_v13, -inf }
 0x7c1   : > { %923 = vmax.xlane.f32.xlu1 %v922_v15 }
 0x7c5   : > { %1095 = vadd.xlane.f32.xlu1 %v1094_v17 }
 0x7d6   : > { %1099 = vrot.lane.b32.xlu1 %v3454_v27, %s3833_s23  ;;  %s3845_s23 = smov 80  }
 0x7da   : > { %1176 = vrot.lane.b32.xlu1 %v839_v10, %s3832_s24  ;;  %v2728_v10 = vld [vmem:[%s3829_s7 + $0x4] ss:$0 sm:$0xff]  ;;  %s3846_s24 = smov 72  }
 0x84e   : > { %v924_v18 = vpop.xlane.xlu1 %923 }
 0x84f   : > { %v925_v19 = vsub.f32 %v921_v13, %v924_v18  ;;  %v2732_v18 = vld [vmem:[%s3829_s7 + $0x5] ss:$0 sm:$0xff] }
 0x851   : > { %v926_v20 = vmul.f32 1.442695, %v925_v19 }
 0x852   : > { %v1096_v24 = vpop.xlane.xlu1 %1095 }
 0x853   : > { %3175 = vpow2.f32 %v926_v20 }
 0x856   : > { %v1100_v31 = vpop.permute.xlu1 %1099 }
 0x85a   : > { %v1177_v38 = vpop.permute.xlu1 %1176 }
 0x85b   : > { %v1187_v40 = vsel %vm514_vm4, %v3481_v47, %v1177_v38  ;;  %v2738_v38 = vld [vmem:[%s3829_s7 + $0x6] ss:$0 sm:$0xff] }
 0x85d   : > { %v3176_v21 = vpop.eup %3175 }
 0x85e   : > { %v928_v23 = vsel %vm514_vm4, %v3176_v21, 0.0 }
 0x85f   : > { %929 = vadd.xlane.f32.xlu0 %v928_v23 }
 0x875   : > { %933 = vrot.lane.b32.xlu0 %v3454_v27, %s3834_s25  ;;  %v3147_v27 = vld [vmem:[%s3826_s4] sm:$0xff]   ;;  %s3851_s25 = smov 8  }
 0x876   : > { %2952 = vmatpush3.bf16.msra.mxu0 %v3147_v27  ;;  %v3155_v27 = vld [vmem:[%s3825_s3 + $0x10] sm:$0xff]  }
 0x877   : > { %2953 = vmatprep.subr.bf16.mxu0 %v3270_v2 }
 0x87a   : > { %2954 = vmatpush3.bf16.msra.mxu0 %v3148_v33  ;;  %v3156_v33 = vld [vmem:[%s3825_s3 + $0x18] sm:$0xff]  }
 0x87b   : > { %2967 = vmatprep.subr.bf16.mxu0 %v3270_v2 }
 0x8ec   : > { %v930_v25 = vpop.xlane.xlu0 %929 }
 0x8ed   : > { %3177 = vrcp.f32 %v930_v25 }
 0x8ee   : > { %3179 = vrcp.f32 %v1096_v24 }
 0x8f0   : > { %v934_v26 = vpop.permute.xlu0 %933 }
 0x8f1   : > { %2937 = vmatpush3.msra.mxu1 %v934_v26 }
 0x8f2   : > { %2946 = vmatprep.subr.mxu1 %v3270_v2 }
 0x8f7   : > { %v3178_v28 = vpop.eup %3177 }
 0x8f8   : > { %v932_v29 = vmul.f32 %v3178_v28, %v3176_v21  ;;  %v3180_v30 = vpop.eup %3179 }
 0x8f9   : > { %v1098_v32 = vmul.f32 %v3180_v30, %v3174_v16 }
 0x8fa   : > { %2939 = vmatmul.mubr.msk.f32.vlgmr.msra.gmra.mrb[14].mxu1 %vm514_vm4, %v932_v29 }
 0x8fb   : > { %2947 = vmatpush3.msra.mxu1 %v1100_v31  ;;  %2948 = vmatprep.mubr.msk.f32.mxu1 %vm3271_vm0, %v3270_v2 }
 0x8fc   : > { %2959 = vmatprep.subr.bf16.mxu1 %v3270_v2 }
 0x8fe   : > { %2949 = vmatmul.mubr.msk.f32.vlgmr.msra.gmra.mrb[16].mxu1 %vm514_vm4, %v1098_v32 }
 0x8ff   : > { %2963 = vmatprep.mubr.msk.bf16.mxu1 %vm3271_vm0, %v3270_v2  ;;  %2960 = vmatpush3.bf16.msra.mxu1 %v3149_v58 }
 0x900   : > { %2961 = vmatprep.subr.bf16.mxu1 %v3270_v2 }
 0x903   : > { %2962 = vmatpush3.bf16.msra.mxu1 %v3150_v59 }
 0x904   : > { %2979 = vmatprep.subr.bf16.mxu1 %v3270_v2 }
 0x9cd   : > { %v1005_v34 = vpop.f32.mrb[14].mxu1 }
 0x9ce   : > { %1180 = vrot.lane.b32.xlu0 %v1005_v34, %s3839_s14  ;;  %v2940_v35 = vpop.f32.mrb[15].mxu1 }
 0x9d1   : > { %v1171_v36 = vpop.f32.mrb[16].mxu1 }
 0x9d2   : > { %1184 = vrot.lane.b32.xlu1 %v1171_v36, %s3838_s17  ;;  %v2950_v37 = vpop.f32.mrb[17].mxu1 }
 0xa40   : > { %v1181_v39 = vpop.permute.xlu0 %1180 }
 0xa41   : > { %v1189_v41 = vsel %vm1188_vm5, %v1187_v40, %v1181_v39  ;;  %v2739_v40 = vld [vmem:[%s3829_s7 + $0x7] ss:$0 sm:$0xff] }
 0xa44   : > { %v1185_v42 = vpop.permute.xlu1 %1184 }
 0xa45   : > { %v1191_v43 = vsel %vm1190_vm6, %v1189_v41, %v1185_v42 }
 0xa46   : > { %v1192_v44 = vpack.c.bf16 %v1191_v43, %v1191_v43 }
 0xa48   : > { %2956 = vmatmul.mubr.msk.bf16.vlgmr.msra.gmra.mrb[8].mxu0 %vm467_vm3, %v1192_v44  ;;  %v2745_v44 = vld [vmem:[%s3829_s7 + $0x8] ss:$0 sm:$0xff] }
 0xa49   : > { %2975 = vmatprep.mubr.msk.bf16.mxu0 %vm3271_vm0, %v3270_v2 }
 0xb1b   : > { %v1251_v46 = vpop.f32.mrb[8].mxu0 }
 0xb1c   : > { %v1252_v48 = vadd.f32 %v2722_v45, %v1251_v46  ;;  %v2957_v49 = vpop.f32.mrb[9].mxu0 }
 0xb1d   : > { %v1254_v50 = vpop.f32.mrb[10].mxu0 }
 0xb1e   : > { %v2958_v47 = vpop.f32.mrb[11].mxu0  ;;  %v1257_v51 = vadd.f32 %v1252_v48, %v3444_v22  ;;  %v3151_v22 = vld [vmem:[%s3828_s6] sm:$0xff]  }
 0xb1f   : > { %2968 = vmatpush3.bf16.msra.mxu0 %v3151_v22 }
 0xb20   : > { %v1260_v52 = vsel %vm467_vm3, %v1257_v51, 0.0  ;;  %2969 = vmatprep.subr.bf16.mxu0 %v3270_v2 }
 0xb21   : > { %1261 = vadd.xlane.f32.xlu0 %v1260_v52 }
 0xb23   : > { %2970 = vmatpush3.bf16.msra.mxu0 %v3152_v60 }
 0xb24   : > { %2971 = vmatprep.subr.bf16.mxu0 %v3270_v2 }
 0xb27   : > { %2972 = vmatpush3.bf16.msra.mxu0 %v3153_v8 }
 0xb28   : > { %2973 = vmatprep.subr.bf16.mxu0 %v3270_v2 }
 0xb2b   : > { %2974 = vmatpush3.bf16.msra.mxu0 %v3154_v9 }
 0xb2c   : > { %2997 = vmatprep.subr.mxu0 %v3270_v2 }
 0xbae   : > { %v1262_v53 = vpop.xlane.xlu0 %1261 }
 0xbaf   : > { %v1264_v54 = vmul.f32 0.03125, %v1262_v53 }
 0xbb1   : > { %v1265_v55 = vsub.f32 %v1257_v51, %v1264_v54 }
 0xbb3   : > { %v1266_v56 = vmul.f32 %v1265_v55, %v1265_v55 }
 0xbb5   : > { %v1267_v57 = vsel %vm467_vm3, %v1266_v56, 0.0 }
 0xbb6   : > { %1268 = vadd.xlane.f32.xlu1 %v1267_v57 }
 0xc43   : > { %v1269_v61 = vpop.xlane.xlu1 %1268 }
 0xc44   : > { %v1270_v62 = vmul.f32 0.03125, %v1269_v61 }
 0xc46   : > { %v1271_v63 = vadd.f32 1e-05, %v1270_v62 }
 0xc48   : > { %3181 = vrsqrt.f32 %v1271_v63 }
 0xc52   : > { %v3182_v0 = vpop.eup %3181 }
 0xc53   : > { %v1273_v3 = vmul.f32 %v3182_v0, %v1265_v55 }
 0xc55   : > { %v1278_v5 = vmul.f32 %v2726_v1, %v1273_v3 }
 0xc57   : > { %v1283_v6 = vadd.f32 %v2727_v4, %v1278_v5 }
 0xc59   : > { %v1284_v7 = vpack.c.bf16 %v1283_v6, %v1283_v6 }
 0xc5b   : > { %2964 = vmatmul.mubr.msk.bf16.vlgmr.msra.gmra.mrb[20].mxu1 %vm467_vm3, %v1284_v7 }
 0xc5c   : > { %2983 = vmatprep.mubr.msk.bf16.mxu1 %vm3271_vm0, %v3270_v2  ;;  %2980 = vmatpush3.bf16.msra.mxu1 %v3155_v27 }
 0xc5d   : > { %2981 = vmatprep.subr.bf16.mxu1 %v3270_v2 }
 0xc60   : > { %2982 = vmatpush3.bf16.msra.mxu1 %v3156_v33 }
 0xc61   : > { %2987 = vmatprep.subr.mxu1 %v3270_v2 }
 0xd2e   : > { %v1343_v11 = vpop.f32.mrb[20].mxu1 }
 0xd2f   : > { %v1344_v12 = vadd.f32 %v2728_v10, %v1343_v11  ;;  %v2965_v13 = vpop.f32.mrb[21].mxu1 }
 0xd30   : > { %v1346_v14 = vpop.f32.mrb[22].mxu1 }
 0xd31   : > { %v1349_v15 = vmax.f32 %v1344_v12, 0.0  ;;  %v2966_v16 = vpop.f32.mrb[23].mxu1 }
 0xd33   : > { %v1350_v17 = vpack.c.bf16 %v1349_v15, %v1349_v15 }
 0xd35   : > { %2976 = vmatmul.mubr.msk.bf16.vlgmr.msra.gmra.mrb[12].mxu0 %vm1388_vm7, %v1350_v17 }
 0xd36   : > { %2999 = vmatprep.mubr.msk.f32.mxu0 %vm3271_vm0, %v3270_v2 }
 0xe08   : > { %v1426_v19 = vpop.f32.mrb[12].mxu0 }
 0xe09   : > { %v1427_v20 = vadd.f32 %v2732_v18, %v1426_v19  ;;  %v2977_v21 = vpop.f32.mrb[13].mxu0 }
 0xe0a   : > { %v1429_v23 = vpop.f32.mrb[14].mxu0 }
 0xe0b   : > { %v2978_v24 = vpop.f32.mrb[15].mxu0  ;;  %v1432_v25 = vadd.f32 %v1427_v20, %v1283_v6 }
 0xe0d   : > { %v1435_v26 = vsel %vm467_vm3, %v1432_v25, 0.0 }
 0xe0e   : > { %1436 = vadd.xlane.f32.xlu0 %v1435_v26 }
 0xe9b   : > { %v1437_v28 = vpop.xlane.xlu0 %1436 }
 0xe9c   : > { %v1438_v29 = vmul.f32 0.03125, %v1437_v28 }
 0xe9e   : > { %v1439_v30 = vsub.f32 %v1432_v25, %v1438_v29 }
 0xea0   : > { %v1440_v31 = vmul.f32 %v1439_v30, %v1439_v30 }
 0xea2   : > { %v1441_v32 = vsel %vm467_vm3, %v1440_v31, 0.0 }
 0xea3   : > { %1442 = vadd.xlane.f32.xlu0 %v1441_v32 }
 0xf30   : > { %v1443_v34 = vpop.xlane.xlu0 %1442 }
 0xf31   : > { %v1444_v35 = vmul.f32 0.03125, %v1443_v34 }
 0xf33   : > { %v1445_v36 = vadd.f32 1e-05, %v1444_v35 }
 0xf35   : > { %3183 = vrsqrt.f32 %v1445_v36 }
 0xf3f   : > { %v3184_v37 = vpop.eup %3183 }
 0xf40   : > { %v1447_v39 = vmul.f32 %v3184_v37, %v1439_v30 }
 0xf42   : > { %v1452_v41 = vmul.f32 %v2738_v38, %v1447_v39 }
 0xf44   : > { %v3607_v42 = vadd.f32 %v2739_v40, %v1452_v41 }
 0xf46   : > { %v1458_v43 = vpack.c.bf16 %v3607_v42, %v3607_v42 }
 0xf48   : > { %2984 = vmatmul.mubr.msk.bf16.vlgmr.msra.gmra.mrb[24].mxu1 %vm467_vm3, %v1458_v43 }
 0xf49   : > { %2989 = vmatprep.mubr.msk.f32.mxu1 %vm3271_vm0, %v3270_v2 }
0x101b   : > { %v1519_v45 = vpop.f32.mrb[24].mxu1 }
0x101c   : > { %v3617_v46 = vadd.f32 %v2745_v44, %v1519_v45  ;;  %v2985_v48 = vpop.f32.mrb[25].mxu1 }
0x101d   : > { %v1522_v49 = vpop.f32.mrb[26].mxu1 }
0x101e   : > { %1692 = vrot.lane.b32.xlu0 %v3617_v46, %s3276_s29  ;;  %1526 = vrot.lane.b32.xlu1 %v3617_v46, %s3273_s26  ;;  %v2986_v50 = vpop.f32.mrb[27].mxu1  ;;  %s3847_s26 = smov 56   ;;  %s3849_s29 = smov 48  }
0x1022   : > { %1856 = vrot.lane.b32.xlu0 %v3617_v46, %s3278_s16  ;;  %1690 = vrot.lane.b32.xlu1 %v3617_v46, %s3275_s28  ;;  %s3848_s28 = smov 64   ;;  %s3850_s16 = smov 40  }
0x1026   : > { %2022 = vrot.lane.b32.xlu0 %v3617_v46, %s3844_s27  ;;  %1858 = vrot.lane.b32.xlu1 %v3617_v46, %s3845_s23  ;;  %s3852_s27 = smov 16   ;;  %s3853_s23 = smov 24  }
0x102a   : > { %2024 = vrot.lane.b32.xlu1 %v3617_v46, %s3846_s24 }
0x1090   : > { %v1693_v47 = vpop.permute.xlu0 %1692  ;;  %v1527_v51 = vpop.permute.xlu1 %1526 }
0x1091   : > { %2988 = vmatpush3.xpose.msk.msra.mxu1 %vm514_vm4, %v1527_v51  ;;  %2998 = vmatpush3.xpose.msk.msra.mxu0 %vm514_vm4, %v1693_v47  ;;  %v3157_v51 = vld [vmem:[%s3826_s4 + $0x10] sm:$0xff]  }
0x1092   : > { %3007 = vmatprep.subr.mxu0 %v3270_v2  ;;  %2992 = vmatprep.subr.mxu1 %v3270_v2 }
0x1094   : > { %2990 = vmatmul.mubr.msk.f32.vlgmr.msra.gmra.mrb[18].mxu1 %vm514_vm4, %v3617_v46  ;;  %v1691_v52 = vpop.permute.xlu1 %1690  ;;  %v1857_v54 = vpop.permute.xlu0 %1856 }
0x1095   : > { %3000 = vmatmul.mubr.msk.f32.vlgmr.msra.gmra.mrb[6].mxu0 %vm514_vm4, %v1691_v52  ;;  %2994 = vmatprep.mubr.msk.f32.mxu1 %vm3271_vm0, %v3270_v2  ;;  %v3158_v52 = vld [vmem:[%s3826_s4 + $0x18] sm:$0xff]  }
0x1096   : > { %3009 = vmatprep.mubr.msk.f32.mxu0 %vm3271_vm0, %v3270_v2 }
0x1098   : > { %v1859_v53 = vpop.permute.xlu1 %1858  ;;  %v2023_v56 = vpop.permute.xlu0 %2022 }
0x1099   : > { %3008 = vmatpush3.xpose.msk.msra.mxu0 %vm514_vm4, %v1859_v53 }
0x109a   : > { %3017 = vmatprep.subr.mxu0 %v3270_v2 }
0x109c   : > { %3010 = vmatmul.mubr.msk.f32.vlgmr.msra.gmra.mrb[16].mxu0 %vm514_vm4, %v1857_v54  ;;  %v2025_v55 = vpop.permute.xlu1 %2024 }
0x109d   : > { %3018 = vmatpush3.xpose.msk.msra.mxu0 %vm514_vm4, %v2025_v55  ;;  %3019 = vmatprep.mubr.msk.f32.mxu0 %vm3271_vm0, %v3270_v2 }
0x109e   : > { %3027 = vmatprep.subr.bf16.mxu0 %v3270_v2 }
0x10a0   : > { %3020 = vmatmul.mubr.msk.f32.vlgmr.msra.gmra.mrb[18].mxu0 %vm514_vm4, %v2023_v56 }
0x10a1   : > { %3031 = vmatprep.mubr.msk.bf16.mxu0 %vm3271_vm0, %v3270_v2  ;;  %3028 = vmatpush3.bf16.msra.mxu0 %v3157_v51 }
0x10a2   : > { %3029 = vmatprep.subr.bf16.mxu0 %v3270_v2 }
0x10a5   : > { %3030 = vmatpush3.bf16.msra.mxu0 %v3158_v52 }
0x10a6   : > { %3043 = vmatprep.subr.bf16.mxu0 %v3270_v2 }
0x1167   : > { %v1598_v57 = vpop.f32.mrb[18].mxu1 }
0x1168   : > { %v1602_v58 = vmul.f32 0.35355338, %v1598_v57  ;;  %v2991_v59 = vpop.f32.mrb[19].mxu1  ;;  %v1764_v22 = vpop.f32.mrb[6].mxu0 }
0x1169   : > { %v1768_v60 = vmul.f32 0.35355338, %v1764_v22  ;;  %v3001_v61 = vpop.f32.mrb[7].mxu0 }
0x116a   : > { %v1603_v62 = vsel %vm514_vm4, %v1602_v58, -inf }
0x116b   : > { %1604 = vmax.xlane.f32.xlu1 %v1603_v62  ;;  %v1769_v63 = vsel %vm514_vm4, %v1768_v60, -inf }
0x116c   : > { %1770 = vmax.xlane.f32.xlu0 %v1769_v63  ;;  %v2766_v63 = vld [vmem:[%s3829_s7 + $0x9] ss:$0 sm:$0xff] }
0x116f   : > { %v1930_v0 = vpop.f32.mrb[16].mxu0 }
0x1170   : > { %v1934_v1 = vmul.f32 0.35355338, %v1930_v0  ;;  %v3011_v3 = vpop.f32.mrb[17].mxu0 }
0x1172   : > { %v1935_v4 = vsel %vm514_vm4, %v1934_v1, -inf }
0x1173   : > { %1936 = vmax.xlane.f32.xlu0 %v1935_v4  ;;  %v2096_v5 = vpop.f32.mrb[18].mxu0 }
0x1174   : > { %v2100_v6 = vmul.f32 0.35355338, %v2096_v5  ;;  %v3021_v7 = vpop.f32.mrb[19].mxu0 }
0x1176   : > { %v2101_v8 = vsel %vm514_vm4, %v2100_v6, -inf }
0x1177   : > { %2102 = vmax.xlane.f32.xlu1 %v2101_v8 }
0x1188   : > { %1780 = vrot.lane.b32.xlu1 %v3617_v46, %s3847_s26  ;;  %s2804_s26 = sshll.u32 %s3361_s13, 4  ;;  %s3289_s13 = smov [#allocation2]  }
0x1189   : > { %s3780_s14 = scalar_lea.hbm %s3831_s9, %s2804_s26  ;;  %s3209_s22 = sshll.u32 %s3289_s13, 4  ;;  %s3210_s22 = int_to_ptr.vmem [resolvable:$false] %s3209_s22 }
0x11f8   : > { %v1605_v9 = vpop.xlane.xlu1 %1604 }
0x11f9   : > { %v1606_v10 = vsub.f32 %v1602_v58, %v1605_v9  ;;  %v1771_v11 = vpop.xlane.xlu0 %1770 }
0x11fa   : > { %v1772_v12 = vsub.f32 %v1768_v60, %v1771_v11 }
0x11fb   : > { %v1607_v13 = vmul.f32 1.442695, %v1606_v10 }
0x11fc   : > { %v1773_v14 = vmul.f32 1.442695, %v1772_v12 }
0x11fd   : > { %3185 = vpow2.f32 %v1607_v13  ;;  %v3159_v13 = vld [vmem:[%s3827_s5 + $0x10] sm:$0xff]  }
0x11fe   : > { %3187 = vpow2.f32 %v1773_v14  ;;  %v3160_v14 = vld [vmem:[%s3827_s5 + $0x18] sm:$0xff]  }
0x1200   : > { %v1937_v25 = vpop.xlane.xlu0 %1936 }
0x1201   : > { %v1938_v26 = vsub.f32 %v1934_v1, %v1937_v25 }
0x1203   : > { %v1939_v28 = vmul.f32 1.442695, %v1938_v26 }
0x1204   : > { %v2103_v15 = vpop.xlane.xlu1 %2102 }
0x1205   : > { %v2104_v16 = vsub.f32 %v2100_v6, %v2103_v15  ;;  %v3162_v15 = vld [vmem:[%s3828_s6 + $0x28] sm:$0xff]  }
0x1207   : > { %v3186_v17 = vpop.eup %3185  ;;  %v2105_v18 = vmul.f32 1.442695, %v2104_v16 }
0x1208   : > { %v3188_v19 = vpop.eup %3187  ;;  %v1609_v20 = vsel %vm514_vm4, %v3186_v17, 0.0  ;;  %v1781_v31 = vpop.permute.xlu1 %1780 }
0x1209   : > { %3189 = vpow2.f32 %v2105_v18  ;;  %1610 = vadd.xlane.f32.xlu0 %v1609_v20  ;;  %v1775_v21 = vsel %vm514_vm4, %v3188_v19, 0.0  ;;  %v2772_v20 = vld [vmem:[%s3829_s7 + $0xa] ss:$0 sm:$0xff] }
0x120a   : > { %1776 = vadd.xlane.f32.xlu1 %v1775_v21  ;;  %3191 = vpow2.f32 %v1939_v28  ;;  %v3163_v28 = vld [vmem:[%s3828_s6 + $0x30] sm:$0xff]  }
0x1213   : > { %v3190_v23 = vpop.eup %3189 }
0x1214   : > { %v2107_v24 = vsel %vm514_vm4, %v3190_v23, 0.0  ;;  %v3192_v29 = vpop.eup %3191 }
0x1215   : > { %2108 = vadd.xlane.f32.xlu1 %v2107_v24  ;;  %v1941_v30 = vsel %vm514_vm4, %v3192_v29, 0.0 }
0x121f   : > { %1614 = vrot.lane.b32.xlu0 %v3617_v46, %s3848_s28 }
0x1226   : > { %1946 = vrot.lane.b32.xlu1 %v3617_v46, %s3849_s29 }
0x123e   : > { %1942 = vadd.xlane.f32.xlu0 %v1941_v30  ;;  %v2779_v30 = vld [vmem:[%s3829_s7 + $0xc] ss:$0 sm:$0xff] }
0x1254   : > { %2112 = vrot.lane.b32.xlu0 %v3617_v46, %s3850_s16 }
0x1296   : > { %v1611_v32 = vpop.xlane.xlu0 %1610 }
0x1297   : > { %3193 = vrcp.f32 %v1611_v32  ;;  %v1777_v27 = vpop.xlane.xlu1 %1776 }
0x1298   : > { %3195 = vrcp.f32 %v1777_v27 }
0x129a   : > { %v1615_v33 = vpop.permute.xlu0 %1614 }
0x129b   : > { %2993 = vmatpush3.msra.mxu1 %v1615_v33 }
0x129c   : > { %3002 = vmatprep.subr.mxu1 %v3270_v2 }
0x12a1   : > { %v3194_v34 = vpop.eup %3193 }
0x12a2   : > { %v1613_v35 = vmul.f32 %v3194_v34, %v3186_v17  ;;  %v2109_v36 = vpop.xlane.xlu1 %2108  ;;  %v3196_v37 = vpop.eup %3195 }
0x12a3   : > { %v1779_v38 = vmul.f32 %v3196_v37, %v3188_v19  ;;  %v2792_v37 = vld [vmem:[%s3829_s7 + $0xd] ss:$0 sm:$0xff] }
0x12a4   : > { %2995 = vmatmul.mubr.msk.f32.vlgmr.msra.gmra.mrb[28].mxu1 %vm514_vm4, %v1613_v35 }
0x12a5   : > { %3003 = vmatpush3.msra.mxu1 %v1781_v31  ;;  %3004 = vmatprep.mubr.msk.f32.mxu1 %vm3271_vm0, %v3270_v2 }
0x12a6   : > { %v1947_v39 = vpop.permute.xlu1 %1946  ;;  %3012 = vmatprep.subr.mxu1 %v3270_v2 }
0x12a8   : > { %3005 = vmatmul.mubr.msk.f32.vlgmr.msra.gmra.mrb[30].mxu1 %vm514_vm4, %v1779_v38 }
0x12a9   : > { %3013 = vmatpush3.msra.mxu1 %v1947_v39  ;;  %3014 = vmatprep.mubr.msk.f32.mxu1 %vm3271_vm0, %v3270_v2 }
0x12aa   : > { %3022 = vmatprep.subr.mxu1 %v3270_v2 }
0x12cb   : > { %v1943_v40 = vpop.xlane.xlu0 %1942 }
0x12cc   : > { %3197 = vrcp.f32 %v1943_v40 }
0x12cd   : > { %3199 = vrcp.f32 %v2109_v36 }
0x12cf   : > { %v2113_v45 = vpop.permute.xlu0 %2112 }
0x12d6   : > { %v3198_v41 = vpop.eup %3197 }
0x12d7   : > { %v1945_v43 = vmul.f32 %v3198_v41, %v3192_v29  ;;  %v3200_v44 = vpop.eup %3199  ;;  %v3164_v29 = vld [vmem:[%s3828_s6 + $0x38] sm:$0xff]  }
0x12d8   : > { %v2111_v46 = vmul.f32 %v3200_v44, %v3190_v23  ;;  %v2773_v23 = vld [vmem:[%s3829_s7 + $0xb] ss:$0 sm:$0xff] }
0x12d9   : > { %3015 = vmatmul.mubr.msk.f32.vlgmr.msra.gmra.mrb[32].mxu1 %vm514_vm4, %v1945_v43 }
0x12da   : > { %3023 = vmatpush3.msra.mxu1 %v2113_v45  ;;  %3024 = vmatprep.mubr.msk.f32.mxu1 %vm3271_vm0, %v3270_v2 }
0x12db   : > { %3035 = vmatprep.subr.bf16.mxu1 %v3270_v2 }
0x12dd   : > { %3025 = vmatmul.mubr.msk.f32.vlgmr.msra.gmra.mrb[34].mxu1 %vm514_vm4, %v2111_v46 }
0x12de   : > { %3039 = vmatprep.mubr.msk.bf16.mxu1 %vm3271_vm0, %v3270_v2  ;;  %3036 = vmatpush3.bf16.msra.mxu1 %v3159_v13 }
0x12df   : > { %3037 = vmatprep.subr.bf16.mxu1 %v3270_v2 }
0x12e2   : > { %3038 = vmatpush3.bf16.msra.mxu1 %v3160_v14 }
0x12e3   : > { %3055 = vmatprep.subr.mxu1 %v3270_v2 }
0x1377   : > { %v1686_v48 = vpop.f32.mrb[28].mxu1 }
0x1378   : > { %v2996_v49 = vpop.f32.mrb[29].mxu1 }
0x137b   : > { %v1852_v50 = vpop.f32.mrb[30].mxu1 }
0x137c   : > { %2189 = vrot.lane.b32.xlu1 %v1852_v50, %s3851_s25  ;;  %v3006_v47 = vpop.f32.mrb[31].mxu1 }
0x13ac   : > { %v2018_v53 = vpop.f32.mrb[32].mxu1 }
0x13ad   : > { %2193 = vrot.lane.b32.xlu0 %v2018_v53, %s3852_s27  ;;  %v3016_v54 = vpop.f32.mrb[33].mxu1  ;;  %s321_s27 = sand.u32 1, %s3259_s10  }
0x13ae   : > { %s322_s28 = scalar_lea.vmem [#allocation2], %s321_s27  ;;  %s2623_s17 = scalar_lea.sflag [#allocation3], %s321_s27 }
0x13af   : > { %s2635_s29 = sshll.u32 %s322_s28, 4  ;;  %s3782_s29 = int_to_ptr.vmem [resolvable:$true] %s2635_s29 }
0x13b0   : > { %v2184_v55 = vpop.f32.mrb[34].mxu1  ;;  %s3205_s21 = scalar_lea.vmem %s3782_s29, 16  ;;  %p3212_p0 = scmp.lt.s32.totalorder %s3782_s29, %s3210_s22 }
0x13b1   : > { %2197 = vrot.lane.b32.xlu1 %v2184_v55, %s3853_s23  ;;  %v3026_v56 = vpop.f32.mrb[35].mxu1  ;;  %v2800_v55 = vld [vmem:[%s3829_s7 + $0xe] ss:$0 sm:$0xff]  ;;  %p3206_p11 = scmp.ne.s32.totalorder %s3782_s29, %s3205_s21  ;;  %s3211_s23 = scalar_lea.vmem %s3210_s22, 32 }
0x13b2   : > { %p3213_p1 = scmp.lt.s32.totalorder %s3211_s23, %s3205_s21 }
0x13b3   : > { %p3207_p12 = pnand %p3206_p11, %p3378_p5 }
0x13b4   : > { %p3214_p2 = por %p3213_p1, %p3212_p0 }
0x13b5   : > { %p3208_p13 = pneg %p3207_p12 }
0x13b7   : > { %p3215_p3 = pnand %p3214_p2, %p3208_p13 }
0x13ee   : > { %v2190_v57 = vpop.permute.xlu1 %2189 }
0x13ef   : > { %v2200_v59 = vsel %vm514_vm4, %v1686_v48, %v2190_v57  ;;  %v2801_v57 = vld [vmem:[%s3829_s7 + $0xf] ss:$0 sm:$0xff] }
0x141f   : > { %v2194_v58 = vpop.permute.xlu0 %2193 }
0x1420   : > { %v2201_v22 = vsel %vm1188_vm5, %v2200_v59, %v2194_v58  ;;  %v2543_v58 = vld [vmem:[%s3830_s8] sm:$0xff]  ;;  %v2544_v59 = vld [vmem:[%s3830_s8 + $0x8] sm:$0xff] }
0x1423   : > { %v2198_v60 = vpop.permute.xlu1 %2197 }
0x1424   : > { %v2202_v61 = vsel %vm1190_vm6, %v2201_v22, %v2198_v60 }
0x1425   : > { %v2203_v62 = vpack.c.bf16 %v2202_v61, %v2202_v61  ;;  %v3072_v61 = vpack.c.bf16 %v2544_v59, %v2543_v58 }
0x1427   : > { %3032 = vmatmul.mubr.msk.bf16.vlgmr.msra.gmra.mrb[20].mxu0 %vm467_vm3, %v2203_v62  ;;  %v2545_v62 = vld [vmem:[%s3830_s8 + $0x10] sm:$0xff] }
0x1428   : > { %3051 = vmatprep.mubr.msk.bf16.mxu0 %vm3271_vm0, %v3270_v2 }
0x14fa   : > { %v2263_v0 = vpop.f32.mrb[20].mxu0 }
0x14fb   : > { %v2264_v1 = vadd.f32 %v2766_v63, %v2263_v0  ;;  %v3033_v3 = vpop.f32.mrb[21].mxu0  ;;  %v2546_v63 = vld [vmem:[%s3830_s8 + $0x18] sm:$0xff]  ;;  %v3287_v0 = vmov 0.125  }
0x14fc   : > { %v2266_v4 = vpop.f32.mrb[22].mxu0  ;;  %v3075_v3 = vpack.c.bf16 %v2546_v63, %v2545_v62 }
0x14fd   : > { %v3034_v5 = vpop.f32.mrb[23].mxu0  ;;  %v2269_v6 = vadd.f32 %v2264_v1, %v3607_v42  ;;  %v3161_v42 = vld [vmem:[%s3828_s6 + $0x20] sm:$0xff]   ;;  %v3288_v1 = vmov 0.0|0.0  }
0x14fe   : > { %3044 = vmatpush3.bf16.msra.mxu0 %v3161_v42 }
0x14ff   : > { %v2272_v7 = vsel %vm467_vm3, %v2269_v6, 0.0  ;;  %3045 = vmatprep.subr.bf16.mxu0 %v3270_v2 }
0x1500   : > { %2273 = vadd.xlane.f32.xlu0 %v2272_v7 }
0x1502   : > { %3046 = vmatpush3.bf16.msra.mxu0 %v3162_v15 }
0x1503   : > { %3047 = vmatprep.subr.bf16.mxu0 %v3270_v2 }
0x1506   : > { %3048 = vmatpush3.bf16.msra.mxu0 %v3163_v28 }
0x1507   : > { %3049 = vmatprep.subr.bf16.mxu0 %v3270_v2 }
0x150a   : > { %3050 = vmatpush3.bf16.msra.mxu0 %v3164_v29 }
0x158d   : > { %v2274_v8 = vpop.xlane.xlu0 %2273 }
0x158e   : > { %v2275_v9 = vmul.f32 0.03125, %v2274_v8 }
0x1590   : > { %v2276_v10 = vsub.f32 %v2269_v6, %v2275_v9  ;;  %v2547_v6 = vld [vmem:[%s3830_s8 + $0x20] sm:$0x1] }
0x1592   : > { %v2277_v11 = vmul.f32 %v2276_v10, %v2276_v10 }
0x1594   : > { %v2278_v12 = vsel %vm467_vm3, %v2277_v11, 0.0 }
0x1595   : > { %2279 = vadd.xlane.f32.xlu1 %v2278_v12 }
0x1622   : > { %v2280_v16 = vpop.xlane.xlu1 %2279 }
0x1623   : > { %v2281_v17 = vmul.f32 0.03125, %v2280_v16 }
0x1625   : > { %v2282_v18 = vadd.f32 1e-05, %v2281_v17 }
0x1627   : > { %3201 = vrsqrt.f32 %v2282_v18 }
0x1631   : > { %v3202_v19 = vpop.eup %3201 }
0x1632   : > { %v2284_v21 = vmul.f32 %v3202_v19, %v2276_v10 }
0x1634   : > { %v2289_v24 = vmul.f32 %v2772_v20, %v2284_v21 }
0x1636   : > { %v2294_v25 = vadd.f32 %v2773_v23, %v2289_v24 }
0x1638   : > { %v2295_v26 = vpack.c.bf16 %v2294_v25, %v2294_v25 }
0x163a   : > { %3040 = vmatmul.mubr.msk.bf16.vlgmr.msra.gmra.mrb[36].mxu1 %vm467_vm3, %v2295_v26 }
0x163b   : > { %3057 = vmatprep.mubr.msk.f32.mxu1 %vm3271_vm0, %v3270_v2 }
0x170d   : > { %v2355_v31 = vpop.f32.mrb[36].mxu1 }
0x170e   : > { %v2356_v32 = vadd.f32 %v2779_v30, %v2355_v31  ;;  %v3041_v27 = vpop.f32.mrb[37].mxu1 }
0x170f   : > { %v2358_v33 = vpop.f32.mrb[38].mxu1 }
0x1710   : > { %v2361_v34 = vmax.f32 %v2356_v32, 0.0  ;;  %v3042_v35 = vpop.f32.mrb[39].mxu1 }
0x1712   : > { %v2362_v36 = vpack.c.bf16 %v2361_v34, %v2361_v34 }
0x1714   : > { %3052 = vmatmul.mubr.msk.bf16.vlgmr.msra.gmra.mrb[24].mxu0 %vm1388_vm7, %v2362_v36 }
0x17e7   : > { %v2438_v38 = vpop.f32.mrb[24].mxu0 }
0x17e8   : > { %v2439_v39 = vadd.f32 %v2792_v37, %v2438_v38  ;;  %v3053_v40 = vpop.f32.mrb[25].mxu0 }
0x17e9   : > { %v2441_v41 = vpop.f32.mrb[26].mxu0 }
0x17ea   : > { %v3054_v43 = vpop.f32.mrb[27].mxu0  ;;  %v2444_v44 = vadd.f32 %v2439_v39, %v2294_v25 }
0x17ec   : > { %v2447_v45 = vsel %vm467_vm3, %v2444_v44, 0.0 }
0x17ed   : > { %2448 = vadd.xlane.f32.xlu0 %v2447_v45 }
0x187a   : > { %v2449_v46 = vpop.xlane.xlu0 %2448 }
0x187b   : > { %v2450_v48 = vmul.f32 0.03125, %v2449_v46 }
0x187d   : > { %v2451_v49 = vsub.f32 %v2444_v44, %v2450_v48 }
0x187f   : > { %v2452_v50 = vmul.f32 %v2451_v49, %v2451_v49 }
0x1881   : > { %v2453_v47 = vsel %vm467_vm3, %v2452_v50, 0.0 }
0x1882   : > { %2454 = vadd.xlane.f32.xlu0 %v2453_v47 }
0x190f   : > { %v2455_v51 = vpop.xlane.xlu0 %2454 }
0x1910   : > { %v2456_v52 = vmul.f32 0.03125, %v2455_v51 }
0x1912   : > { %v2457_v53 = vadd.f32 1e-05, %v2456_v52 }
0x1914   : > { %3203 = vrsqrt.f32 %v2457_v53 }
0x191e   : > { %v3204_v54 = vpop.eup %3203 }
0x191f   : > { %v2459_v56 = vmul.f32 %v3204_v54, %v2451_v49 }
0x1921   : > { %v2464_v22 = vmul.f32 %v2800_v55, %v2459_v56 }
0x1923   : > { %v2469_v60 = vadd.f32 %v2801_v57, %v2464_v22 }
0x1925   : > { %3056 = vmatpush3.msra.mxu1 %v2469_v60 }
0x1926   : > { %3058 = vmatmul.mubr.msk.f32.vlgmr.msra.gmra.mrb[40].mxu1 %vm514_vm4, %v3287_v0  ;;  %3071 = vmatprep.subr.bf16.mxu1 %v3288_v1 }
0x1927   : > { %3073 = vmatpush3.bf16.msra.mxu1 %v3072_v61  ;;  %3068 = vmatprep.mubr.msk.f32.mxu1 %vm3271_vm0, %v3270_v2 }
0x1928   : > { %3074 = vmatprep.subr.bf16.mxu1 %v3288_v1 }
0x192b   : > { %3076 = vmatpush3.bf16.msra.mxu1 %v3075_v3 }
0x19f9   : > { %v2539_v4 = vpop.f32.mrb[40].mxu1 }
0x19fa   : > { %v3059_v5 = vpop.f32.mrb[41].mxu1  ;;  %3069 = vmatmul.mubr.msk.f32.vlgmr.msra.gmra.mrb[42].mxu1 %vm467_vm3, %v2539_v4 }
0x1acd   : > { %v2617_v7 = vpop.f32.mrb[42].mxu1 }
0x1ace   : > { %v2618_v8 = vadd.f32 %v2617_v7, %v2547_v6  ;;  %v3070_v9 = vpop.f32.mrb[43].mxu1 }
0x1ad0   : > { %2621 = vst [vmem:[%s322_s28] sm:$0x1] %v2618_v8 }
0x1ad1   : > { %3218 = shalt.err (!%p3215_p3)
}
0x1ad2   : > { %s3219_s27 = scalar_lea.hbm %s3780_s14, 16  ;;  %s3223_s28 = scalar_lea.hbm %s3831_s9, 32 }
0x1ad3   : > { %p3220_p4 = scmp.ne.s32.totalorder %s3780_s14, %s3219_s27  ;;  %p3224_p9 = scmp.lt.u32.totalorder %s3780_s14, %s3831_s9 }
0x1ad4   : > { %p3225_p10 = scmp.lt.u32.totalorder %s3223_s28, %s3219_s27  ;;  %p3227_p12 = scmp.lt.u32.totalorder %s3219_s27, %s3780_s14 }
0x1ad5   : > { %p3221_p7 = pnand %p3220_p4, %p3378_p5 }
0x1ad6   : > { %p3226_p11 = por %p3225_p10, %p3224_p9 }
0x1ad7   : > { %p3222_p8 = pneg %p3221_p7 }
0x1ad8   : > { %p3228_p13 = por %p3227_p12, %p3226_p11 }
0x1ada   : > { %p3229_p0 = pnand %p3228_p13, %p3222_p8 }
0x1adc   : > { %3232 = shalt.err (!%p3229_p0)
}
0x1add   : > { %3077 = dma.vmem_to_hbm [thread:$0]  (%p3378_p5), %s3782_s29, 16, %s3780_s14, %s2623_s17  }
0x1ade PF: > { %p3083_p1 = scmp.ge.s32.totalorder %s3267_s12, 2  ;;  %s2647_s21 = sand.u32 1, %s3255_s30  }
0x1adf   : > { %s2648_s13 = scalar_lea.sflag [#allocation3], %s2647_s21 }
0x1ae0   : > { %p3080_p2 = pnand %p3083_p1, %p3382_p6 }
0x1ae2   : > { %3250 = dma.done.wait (!%p3080_p2), %s2648_s13, 16  }
0x1ae3   : > { %3252 = vsyncadd (!%p3080_p2), %s2648_s13, 4294967280  ;;  %p19_p3 = scmp.ge.s32.totalorder %s3365_s15, 4   ;;  %s3854_s30 = smov %s3259_s10 }
0x1ae4   : > { %s3855_s10 = smov %s3263_s11  ;;  %s3856_s11 = smov %s3376_s18 }
0x1ae5   : > { %s3857_s12 = smov %s3365_s15  ;;  %21 = sbr.rel (!%p19_p3) target bundleno = 3 (0x3), region = 96 }
0x1aec   :  { %2652 = vsyncpa [#allocation3], 1 }
0x1aed   :  { %2654 = vsyncpa [#allocation3 + $0x1], 1 }

</bundles_post_ra>
